<compile_context>
chip_gen: v7x
topology: tpu7x:2x2x1
jax: 0.10.0
libtpu: 0.0.40
codegen_flags: <defaults>
</compile_context>

<pallas_src>
import functools

import jax
import jax.numpy as jnp
from jax.experimental import pallas as pl
from jax.experimental.pallas import tpu as pltpu


def _round_up(x, m):
    return ((x + m - 1) // m) * m


# ----------------------------- Pallas kernels ------------------------------ #

def _conv_stats_kernel(p_ref, w_ref, sum_ref, ssq_ref):
    # p_ref: (tm, Kp) bf16 im2col tile, w_ref: (Kp, Cp) bf16 weights.
    # MXU matmul with f32 accumulation; only per-tile BN partial statistics are
    # emitted (no conv intermediate is written back to HBM).
    y = jnp.dot(p_ref[...], w_ref[...], preferred_element_type=jnp.float32)
    s = jnp.sum(y, axis=0, keepdims=True)        # (1, Cp) per-tile sum
    ss = jnp.sum(y * y, axis=0, keepdims=True)   # (1, Cp) per-tile sum of squares
    # Stat output blocks are (8, Cp) for sublane alignment; row 0 carries the
    # partial, rows 1..7 are zero (harmless under the wrapper-side sum).
    row = jax.lax.broadcasted_iota(jnp.int32, sum_ref.shape, 0)
    sum_ref[...] = jnp.where(row == 0, s, 0.0)
    ssq_ref[...] = jnp.where(row == 0, ss, 0.0)


def _conv_bn_leaky_kernel(p_ref, w_ref, scale_ref, bias_ref, o_ref, *, slope):
    # Recompute the (cheap, mem-bound) matmul and fuse BN affine + LeakyReLU
    # directly into the final output tile.  Avoids a full (Mp, Cp) f32
    # intermediate round-trip through HBM.
    y = jnp.dot(p_ref[...], w_ref[...], preferred_element_type=jnp.float32)
    out = y * scale_ref[...] + bias_ref[...]
    o_ref[...] = jnp.where(out >= 0, out, slope * out)


# ------------------------------- glue (JAX) -------------------------------- #

def _im2col(x_nhwc, kh, kw, stride, padding, dilation):
    N, H, W, C = x_nhwc.shape
    OH = (H + 2 * padding - dilation * (kh - 1) - 1) // stride + 1
    OW = (W + 2 * padding - dilation * (kw - 1) - 1) // stride + 1
    xp = jnp.pad(x_nhwc, ((0, 0), (padding, padding), (padding, padding), (0, 0)))
    cols = []
    for i in range(kh):
        for j in range(kw):
            hs, ws = i * dilation, j * dilation
            patch = xp[:, hs:hs + stride * (OH - 1) + 1:stride,
                          ws:ws + stride * (OW - 1) + 1:stride, :]
            cols.append(patch)
    patches = jnp.stack(cols, axis=3)                       # (N, OH, OW, KH*KW, C)
    return patches.reshape(N * OH * OW, kh * kw * C), OH, OW


def _vmem_limit_bytes(tm, Kp, Cp):
    # Double-buffered tile footprint of the larger (pass-2) kernel + headroom,
    # clamped to a budget that is safe on v5e/v6e (128 MiB) and v7x (64 MiB).
    per_step = (tm * Kp * 2          # bf16 patch tile
                + Kp * Cp * 2        # bf16 weight tile
                + 2 * Cp * 4         # scale + bias rows
                + tm * Cp * 4)       # f32 output tile
    need = 2 * per_step + (2 << 20)  # 2-deep pipeline + margin
    return int(min(max(need, 16 << 20), 48 << 20))


@functools.partial(
    jax.jit,
    static_argnames=("stride", "padding", "dilation", "eps",
                     "negative_slope", "tile_m"))
def bn_conv2d_leaky(x_nchw, weight_oihw, gamma, beta, *,
                    stride=1, padding=0, dilation=1,
                    eps=1e-5, negative_slope=0.01, tile_m=1024):
    """Forward pass of BN_Conv2d_Leaky (bias=False conv, groups=1)."""
    O, I, KH, KW = weight_oihw.shape
    N = x_nchw.shape[0]

    # Build the im2col patch slab directly in bf16 (MXU input dtype), NHWC.
    x = jnp.transpose(x_nchw, (0, 2, 3, 1)).astype(jnp.bfloat16)
    patches, OH, OW = _im2col(x, KH, KW, stride, padding, dilation)
    M, K = patches.shape

    # Lane / contraction padding: Cout and K up to multiples of 128.
    Cp = _round_up(O, 128)
    Kp = _round_up(K, 128)
    tm = min(tile_m, _round_up(M, 8))
    Mp = _round_up(M, tm)
    grid_m = Mp // tm

    patches_p = jnp.pad(patches, ((0, Mp - M), (0, Kp - K)))            # bf16
    w_mat = jnp.transpose(weight_oihw, (2, 3, 1, 0)).reshape(K, O)
    w_mat = jnp.pad(w_mat.astype(jnp.float32),
                    ((0, Kp - K), (0, Cp - O))).astype(jnp.bfloat16)

    cparams = pltpu.CompilerParams(
        dimension_semantics=("parallel",),
        vmem_limit_bytes=_vmem_limit_bytes(tm, Kp, Cp),
    )

    # Pass 1: conv matmul -> per-tile BN partial statistics only (fully
    # parallel grid, no conv intermediate written to HBM).
    psum, pssq = pl.pallas_call(
        _conv_stats_kernel,
        out_shape=(jax.ShapeDtypeStruct((grid_m * 8, Cp), jnp.float32),
                   jax.ShapeDtypeStruct((grid_m * 8, Cp), jnp.float32)),
        grid=(grid_m,),
        in_specs=[pl.BlockSpec((tm, Kp), lambda i: (i, 0)),
                  pl.BlockSpec((Kp, Cp), lambda i: (0, 0))],
        out_specs=(pl.BlockSpec((8, Cp), lambda i: (i, 0)),
                   pl.BlockSpec((8, Cp), lambda i: (i, 0))),
        compiler_params=cparams,
    )(patches_p, w_mat)

    # Tiny per-channel reduction of the partials (padded rows contribute zeros,
    # so divide by the true M, not Mp -> unbiased mean / biased batch variance,
    # matching PyTorch training-mode BatchNorm normalization).
    total_sum = jnp.sum(psum, axis=0)                       # (Cp,)
    total_ssq = jnp.sum(pssq, axis=0)                       # (Cp,)
    mean = total_sum / M
    var = jnp.maximum(total_ssq / M - mean * mean, 0.0)
    # TODO(synk): E[y^2]-E[y]^2 can cancel for |mean| >> std; switch to a
    #             centered second pass if tolerances tighten.

    gamma_p = jnp.pad(gamma.astype(jnp.float32), (0, Cp - O))
    beta_p = jnp.pad(beta.astype(jnp.float32), (0, Cp - O))
    scale = gamma_p * jax.lax.rsqrt(var + eps)              # (Cp,)
    bias = beta_p - mean * scale                            # (Cp,)

    # Pass 2: fused conv-matmul + BN affine + LeakyReLU -> final (Mp, Cp) slab.
    out_p = pl.pallas_call(
        functools.partial(_conv_bn_leaky_kernel, slope=negative_slope),
        out_shape=jax.ShapeDtypeStruct((Mp, Cp), jnp.float32),
        grid=(grid_m,),
        in_specs=[pl.BlockSpec((tm, Kp), lambda i: (i, 0)),
                  pl.BlockSpec((Kp, Cp), lambda i: (0, 0)),
                  pl.BlockSpec((1, Cp), lambda i: (0, 0)),
                  pl.BlockSpec((1, Cp), lambda i: (0, 0))],
        out_specs=pl.BlockSpec((tm, Cp), lambda i: (i, 0)),
        compiler_params=cparams,
    )(patches_p, w_mat, scale.reshape(1, Cp), bias.reshape(1, Cp))

    # Slice off the padding and restore NCHW (fused into this jit program).
    out_nhwc = out_p[:M, :O].reshape(N, OH, OW, O)
    return jnp.transpose(out_nhwc, (0, 3, 1, 2))


# ------------------------------ reference ---------------------------------- #

def _reference(x, w, gamma, beta, stride, padding, dilation, eps, slope):
    # Reference uses the same bf16-input / f32-accumulate matmul precision as
    # the kernel's MXU path; BN + LeakyReLU in f32.
    y = jax.lax.conv_general_dilated(
        x.astype(jnp.bfloat16), w.astype(jnp.bfloat16),
        window_strides=(stride, stride),
        padding=[(padding, padding), (padding, padding)],
        rhs_dilation=(dilation, dilation),
        dimension_numbers=("NCHW", "OIHW", "NCHW"),
        preferred_element_type=jnp.float32)
    mean = jnp.mean(y, axis=(0, 2, 3), keepdims=True)
    var = jnp.mean((y - mean) ** 2, axis=(0, 2, 3), keepdims=True)
    yn = (y - mean) * jax.lax.rsqrt(var + eps)
    out = yn * gamma.reshape(1, -1, 1, 1) + beta.reshape(1, -1, 1, 1)
    return jnp.where(out >= 0, out, slope * out)


# --------------------------------- main ------------------------------------ #

if __name__ == "__main__":
    # module config: BN_Conv2d_Leaky(in_channels=4, out_channels=8, kernel_size=3,
    #                                stride=1, padding=1, dilation=1, groups=1, bias=False)
    N, Cin, H, W = 2, 4, 16, 16
    Cout, KH, KW = 8, 3, 3
    stride, padding, dilation = 1, 1, 1

    key = jax.random.PRNGKey(0)
    kx, kw = jax.random.split(key)
    x = jax.random.normal(kx, (N, Cin, H, W), dtype=jnp.float32)
    weight = 0.1 * jax.random.normal(kw, (Cout, Cin, KH, KW), dtype=jnp.float32)
    gamma = 1.0 + 0.1 * jnp.arange(Cout, dtype=jnp.float32)   # BN weight
    beta = 0.05 * jnp.arange(Cout, dtype=jnp.float32)         # BN bias

    out = bn_conv2d_leaky(x, weight, gamma, beta,
                          stride=stride, padding=padding, dilation=dilation)
    out = jax.block_until_ready(out)

    ref = _reference(x, weight, gamma, beta, stride, padding, dilation,
                     eps=1e-5, slope=0.01)
    assert out.shape == (N, Cout, H, W), out.shape
    assert jnp.allclose(out, ref, atol=1e-3, rtol=1e-3), \
        f"mismatch vs reference (max err {jnp.max(jnp.abs(out - ref))})"

    print("KERNEL_OK")
</pallas_src>

<mosaic_0001>
module attributes {stable_mosaic.version = 11 : i64} {
  func.func @_conv_stats_kernel(%arg0: i32, %arg1: memref<512x128xbf16, #tpu.memory_space<vmem>>, %arg2: memref<128x128xbf16, #tpu.memory_space<vmem>>, %arg3: memref<8x128xf32, #tpu.memory_space<vmem>>, %arg4: memref<8x128xf32, #tpu.memory_space<vmem>>) attributes {dimension_semantics = [#tpu.dimension_semantics<parallel>], iteration_bounds = array<i64: 1>, scalar_prefetch = 0 : i64, scratch_operands = 0 : i64, tpu.core_type = #tpu.core_type<tc>, window_params = [{transform_indices = @transform_0, window_bounds = array<i64: 512, 128>}, {pipeline_mode = #tpu.pipeline_mode<synchronous>, transform_indices = @transform_1, window_bounds = array<i64: 128, 128>}, {transform_indices = @transform_2, window_bounds = array<i64: 8, 128>}, {transform_indices = @transform_3, window_bounds = array<i64: 8, 128>}]} {
    %c0 = arith.constant 0 : index
    %c0_0 = arith.constant 0 : index
    %0 = vector.load %arg1[%c0, %c0_0] : memref<512x128xbf16, #tpu.memory_space<vmem>>, vector<512x128xbf16>
    %c0_1 = arith.constant 0 : index
    %c0_2 = arith.constant 0 : index
    %1 = vector.load %arg2[%c0_1, %c0_2] : memref<128x128xbf16, #tpu.memory_space<vmem>>, vector<128x128xbf16>
    %cst = arith.constant dense<0.000000e+00> : vector<512x128xf32>
    %2 = tpu.matmul %0, %1, %cst {dimension_numbers = #tpu.dot_dimension_numbers<[1], [0], [0], [1], [0, 0, 1, 1], [], []>} : vector<512x128xbf16>, vector<128x128xbf16>, vector<512x128xf32> -> vector<512x128xf32>
    %cst_3 = arith.constant dense<0.000000e+00> : vector<128xf32>
    %3 = vector.multi_reduction <add>, %2, %cst_3 [0] : vector<512x128xf32> to vector<128xf32>
    %4 = vector.shape_cast %3 : vector<128xf32> to vector<1x128xf32>
    %5 = arith.mulf %2, %2 : vector<512x128xf32>
    %cst_4 = arith.constant dense<0.000000e+00> : vector<128xf32>
    %6 = vector.multi_reduction <add>, %5, %cst_4 [0] : vector<512x128xf32> to vector<128xf32>
    %7 = vector.shape_cast %6 : vector<128xf32> to vector<1x128xf32>
    %8 = tpu.iota {dimensions = array<i32: 0>} : vector<8x128xi32>
    %c0_i32 = arith.constant 0 : i32
    %9 = vector.broadcast %c0_i32 : i32 to vector<8x128xi32>
    %10 = arith.cmpi eq, %8, %9 : vector<8x128xi32>
    %cst_5 = arith.constant 0.000000e+00 : f32
    %11 = vector.shape_cast %4 : vector<1x128xf32> to vector<1x128xf32>
    %12 = vector.broadcast %11 : vector<1x128xf32> to vector<8x128xf32>
    %13 = vector.broadcast %cst_5 : f32 to vector<8x128xf32>
    %14 = arith.select %10, %12, %13 : vector<8x128xi1>, vector<8x128xf32>
    %c0_6 = arith.constant 0 : index
    %c0_7 = arith.constant 0 : index
    %15 = vector.load %arg3[%c0_6, %c0_7] : memref<8x128xf32, #tpu.memory_space<vmem>>, vector<8x128xf32>
    tpu.vector_store %arg3[%c0_6, %c0_7], %14 {strides = array<i32>} : memref<8x128xf32, #tpu.memory_space<vmem>>, vector<8x128xf32>,
    %c0_i32_8 = arith.constant 0 : i32
    %16 = vector.broadcast %c0_i32_8 : i32 to vector<8x128xi32>
    %17 = arith.cmpi eq, %8, %16 : vector<8x128xi32>
    %cst_9 = arith.constant 0.000000e+00 : f32
    %18 = vector.shape_cast %7 : vector<1x128xf32> to vector<1x128xf32>
    %19 = vector.broadcast %18 : vector<1x128xf32> to vector<8x128xf32>
    %20 = vector.broadcast %cst_9 : f32 to vector<8x128xf32>
    %21 = arith.select %17, %19, %20 : vector<8x128xi1>, vector<8x128xf32>
    %c0_10 = arith.constant 0 : index
    %c0_11 = arith.constant 0 : index
    %22 = vector.load %arg4[%c0_10, %c0_11] : memref<8x128xf32, #tpu.memory_space<vmem>>, vector<8x128xf32>
    tpu.vector_store %arg4[%c0_10, %c0_11], %21 {strides = array<i32>} : memref<8x128xf32, #tpu.memory_space<vmem>>, vector<8x128xf32>,
    return
  }
  func.func @transform_0(%arg0: i32) -> (i32, i32) {
    %c0_i32 = arith.constant 0 : i32
    %c0_i32_0 = arith.constant 0 : i32
    return %arg0, %c0_i32 : i32, i32
  }
  func.func @transform_1(%arg0: i32) -> (i32, i32) {
    %c0_i32 = arith.constant 0 : i32
    %c0_i32_0 = arith.constant 0 : i32
    %c0_i32_1 = arith.constant 0 : i32
    return %c0_i32, %c0_i32_0 : i32, i32
  }
  func.func @transform_2(%arg0: i32) -> (i32, i32) {
    %c0_i32 = arith.constant 0 : i32
    %c0_i32_0 = arith.constant 0 : i32
    return %arg0, %c0_i32 : i32, i32
  }
  func.func @transform_3(%arg0: i32) -> (i32, i32) {
    %c0_i32 = arith.constant 0 : i32
    %c0_i32_0 = arith.constant 0 : i32
    return %arg0, %c0_i32 : i32, i32
  }
}

module attributes {stable_mosaic.version = 11 : i64} {
  func.func @_conv_bn_leaky_kernel(%arg0: i32, %arg1: memref<512x128xbf16, #tpu.memory_space<vmem>>, %arg2: memref<128x128xbf16, #tpu.memory_space<vmem>>, %arg3: memref<1x128xf32, #tpu.memory_space<vmem>>, %arg4: memref<1x128xf32, #tpu.memory_space<vmem>>, %arg5: memref<512x128xf32, #tpu.memory_space<vmem>>) attributes {dimension_semantics = [#tpu.dimension_semantics<parallel>], iteration_bounds = array<i64: 1>, scalar_prefetch = 0 : i64, scratch_operands = 0 : i64, tpu.core_type = #tpu.core_type<tc>, window_params = [{transform_indices = @transform_0, window_bounds = array<i64: 512, 128>}, {pipeline_mode = #tpu.pipeline_mode<synchronous>, transform_indices = @transform_1, window_bounds = array<i64: 128, 128>}, {pipeline_mode = #tpu.pipeline_mode<synchronous>, transform_indices = @transform_2, window_bounds = array<i64: 1, 128>}, {pipeline_mode = #tpu.pipeline_mode<synchronous>, transform_indices = @transform_3, window_bounds = array<i64: 1, 128>}, {transform_indices = @transform_4, window_bounds = array<i64: 512, 128>}]} {
    %c0 = arith.constant 0 : index
    %c0_0 = arith.constant 0 : index
    %0 = vector.load %arg1[%c0, %c0_0] : memref<512x128xbf16, #tpu.memory_space<vmem>>, vector<512x128xbf16>
    %c0_1 = arith.constant 0 : index
    %c0_2 = arith.constant 0 : index
    %1 = vector.load %arg2[%c0_1, %c0_2] : memref<128x128xbf16, #tpu.memory_space<vmem>>, vector<128x128xbf16>
    %cst = arith.constant dense<0.000000e+00> : vector<512x128xf32>
    %2 = tpu.matmul %0, %1, %cst {dimension_numbers = #tpu.dot_dimension_numbers<[1], [0], [0], [1], [0, 0, 1, 1], [], []>} : vector<512x128xbf16>, vector<128x128xbf16>, vector<512x128xf32> -> vector<512x128xf32>
    %c0_3 = arith.constant 0 : index
    %c0_4 = arith.constant 0 : index
    %3 = vector.load %arg3[%c0_3, %c0_4] : memref<1x128xf32, #tpu.memory_space<vmem>>, vector<1x128xf32>
    %4 = vector.broadcast %3 : vector<1x128xf32> to vector<512x128xf32>
    %5 = arith.mulf %2, %4 : vector<512x128xf32>
    %c0_5 = arith.constant 0 : index
    %c0_6 = arith.constant 0 : index
    %6 = vector.load %arg4[%c0_5, %c0_6] : memref<1x128xf32, #tpu.memory_space<vmem>>, vector<1x128xf32>
    %7 = vector.broadcast %6 : vector<1x128xf32> to vector<512x128xf32>
    %8 = arith.addf %5, %7 : vector<512x128xf32>
    %cst_7 = arith.constant 0.000000e+00 : f32
    %9 = vector.broadcast %cst_7 : f32 to vector<512x128xf32>
    %10 = arith.cmpf oge, %8, %9 : vector<512x128xf32>
    %cst_8 = arith.constant 0.00999999977 : f32
    %11 = vector.broadcast %cst_8 : f32 to vector<512x128xf32>
    %12 = arith.mulf %11, %8 : vector<512x128xf32>
    %13 = arith.select %10, %8, %12 : vector<512x128xi1>, vector<512x128xf32>
    %c0_9 = arith.constant 0 : index
    %c0_10 = arith.constant 0 : index
    %14 = vector.load %arg5[%c0_9, %c0_10] : memref<512x128xf32, #tpu.memory_space<vmem>>, vector<512x128xf32>
    tpu.vector_store %arg5[%c0_9, %c0_10], %13 {strides = array<i32>} : memref<512x128xf32, #tpu.memory_space<vmem>>, vector<512x128xf32>,
    return
  }
  func.func @transform_0(%arg0: i32) -> (i32, i32) {
    %c0_i32 = arith.constant 0 : i32
    %c0_i32_0 = arith.constant 0 : i32
    return %arg0, %c0_i32 : i32, i32
  }
  func.func @transform_1(%arg0: i32) -> (i32, i32) {
    %c0_i32 = arith.constant 0 : i32
    %c0_i32_0 = arith.constant 0 : i32
    %c0_i32_1 = arith.constant 0 : i32
    return %c0_i32, %c0_i32_0 : i32, i32
  }
  func.func @transform_2(%arg0: i32) -> (i32, i32) {
    %c0_i32 = arith.constant 0 : i32
    %c0_i32_0 = arith.constant 0 : i32
    %c0_i32_1 = arith.constant 0 : i32
    return %c0_i32, %c0_i32_0 : i32, i32
  }
  func.func @transform_3(%arg0: i32) -> (i32, i32) {
    %c0_i32 = arith.constant 0 : i32
    %c0_i32_0 = arith.constant 0 : i32
    %c0_i32_1 = arith.constant 0 : i32
    return %c0_i32, %c0_i32_0 : i32, i32
  }
  func.func @transform_4(%arg0: i32) -> (i32, i32) {
    %c0_i32 = arith.constant 0 : i32
    %c0_i32_0 = arith.constant 0 : i32
    return %arg0, %c0_i32 : i32, i32
  }
}

</mosaic_0001>

<bundles_post_ra>
// kernel: bn_conv2d_leaky.2
= control target key start
LH: loop header
LB: loop body
LE: loop exit
PB: predicated region body
PF: predicated region fallthrough
CT: control target
= control target key end

     0   :  { %s1362_s1 = inlined_call_operand.vmem [shape: bf16[128,128], index: 1, kind: input, shape index: {}]   ;;  %s1363_s0 = inlined_call_operand.vmem [shape: bf16[512,128], index: 0, kind: input, shape index: {}]   ;;  %s1364_s2 = inlined_call_operand.vmem [shape: f32[8,128], index: 2, kind: output, shape index: {0}]   ;;  %s1365_s3 = inlined_call_operand.vmem [shape: f32[8,128], index: 3, kind: output, shape index: {1}]  }
   0x1   :  { %v1016_v0 = vld [vmem:[%s1362_s1] sm:$0xff]   ;;  %v1017_v1 = vld [vmem:[%s1362_s1 + $0x8] sm:$0xff]   ;;  %v1018_v2 = vld [vmem:[%s1362_s1 + $0x10] sm:$0xff]  }
   0x2   :  { %920 = vmatprep.subr.bf16.mxu0 %v1016_v0  ;;  %1000 = vmatprep.subr.bf16.mxu1 %v1016_v0  ;;  %v1019_v3 = vld [vmem:[%s1362_s1 + $0x18] sm:$0xff]   ;;  %v1024_v4 = vld [vmem:[%s1363_s0] sm:$0xff]   ;;  %v1021_v6 = vld [vmem:[%s1362_s1 + $0x28] sm:$0xff]  }
   0x3   :  { %921 = vmatpush3.bf16.msra.mxu0 %v1016_v0  ;;  %1008 = vmatpush3.bf16.msra.mxu1 %v1016_v0  ;;  %v1020_v5 = vld [vmem:[%s1362_s1 + $0x20] sm:$0xff]   ;;  %v1022_v7 = vld [vmem:[%s1362_s1 + $0x30] sm:$0xff]   ;;  %v1023_v8 = vld [vmem:[%s1362_s1 + $0x38] sm:$0xff]  }
   0x4   :  { %922 = vmatprep.subr.bf16.mxu0 %v1017_v1  ;;  %1001 = vmatprep.subr.bf16.mxu1 %v1017_v1  ;;  %v1040_v9 = vld [vmem:[%s1363_s0 + $0x80] sm:$0xff]   ;;  %v1025_v10 = vld [vmem:[%s1363_s0 + $0x8] sm:$0xff]   ;;  %v1026_v11 = vld [vmem:[%s1363_s0 + $0x10] sm:$0xff]  }
   0x5   :  { %936 = vmatprep.mubr.bf16.mxu0 %v1024_v4  ;;  %968 = vmatprep.mubr.bf16.mxu1 %v1040_v9  ;;  %v1041_v12 = vld [vmem:[%s1363_s0 + $0x88] sm:$0xff]   ;;  %v1042_v13 = vld [vmem:[%s1363_s0 + $0x90] sm:$0xff]   ;;  %v1027_v14 = vld [vmem:[%s1363_s0 + $0x18] sm:$0xff]  }
   0x6   :  { %v1028_v15 = vld [vmem:[%s1363_s0 + $0x20] sm:$0xff]   ;;  %v1043_v16 = vld [vmem:[%s1363_s0 + $0x98] sm:$0xff]   ;;  %v1029_v18 = vld [vmem:[%s1363_s0 + $0x28] sm:$0xff]  }
   0x7   :  { %923 = vmatpush3.bf16.msra.mxu0 %v1017_v1  ;;  %1009 = vmatpush3.bf16.msra.mxu1 %v1017_v1  ;;  %v1044_v17 = vld [vmem:[%s1363_s0 + $0xa0] sm:$0xff]   ;;  %v1045_v19 = vld [vmem:[%s1363_s0 + $0xa8] sm:$0xff]   ;;  %v1030_v20 = vld [vmem:[%s1363_s0 + $0x30] sm:$0xff]  }
   0x8   :  { %924 = vmatprep.subr.bf16.mxu0 %v1018_v2  ;;  %1002 = vmatprep.subr.bf16.mxu1 %v1018_v2  ;;  %v1046_v21 = vld [vmem:[%s1363_s0 + $0xb0] sm:$0xff]   ;;  %v1031_v22 = vld [vmem:[%s1363_s0 + $0x38] sm:$0xff]   ;;  %v1032_v24 = vld [vmem:[%s1363_s0 + $0x40] sm:$0xff]  }
   0x9   :  { %v1047_v23 = vld [vmem:[%s1363_s0 + $0xb8] sm:$0xff]   ;;  %v1048_v25 = vld [vmem:[%s1363_s0 + $0xc0] sm:$0xff]   ;;  %v1033_v26 = vld [vmem:[%s1363_s0 + $0x48] sm:$0xff]  }
   0xa   :  { %v1049_v27 = vld [vmem:[%s1363_s0 + $0xc8] sm:$0xff]   ;;  %v1034_v28 = vld [vmem:[%s1363_s0 + $0x50] sm:$0xff]   ;;  %v1035_v30 = vld [vmem:[%s1363_s0 + $0x58] sm:$0xff]  }
   0xb   :  { %925 = vmatpush3.bf16.msra.mxu0 %v1018_v2  ;;  %1010 = vmatpush3.bf16.msra.mxu1 %v1018_v2  ;;  %v1050_v29 = vld [vmem:[%s1363_s0 + $0xd0] sm:$0xff]   ;;  %v1051_v31 = vld [vmem:[%s1363_s0 + $0xd8] sm:$0xff]   ;;  %v1036_v32 = vld [vmem:[%s1363_s0 + $0x60] sm:$0xff]  }
   0xc   :  { %926 = vmatprep.subr.bf16.mxu0 %v1019_v3  ;;  %1003 = vmatprep.subr.bf16.mxu1 %v1019_v3  ;;  %v1052_v33 = vld [vmem:[%s1363_s0 + $0xe0] sm:$0xff]   ;;  %v1037_v34 = vld [vmem:[%s1363_s0 + $0x68] sm:$0xff]   ;;  %v1038_v36 = vld [vmem:[%s1363_s0 + $0x70] sm:$0xff]  }
   0xd   :  { %v1053_v35 = vld [vmem:[%s1363_s0 + $0xe8] sm:$0xff]   ;;  %v1054_v37 = vld [vmem:[%s1363_s0 + $0xf0] sm:$0xff]   ;;  %v1039_v38 = vld [vmem:[%s1363_s0 + $0x78] sm:$0xff]  }
   0xe   :  { %v1055_v39 = vld [vmem:[%s1363_s0 + $0xf8] sm:$0xff]  }
   0xf   :  { %927 = vmatpush3.bf16.msra.mxu0 %v1019_v3  ;;  %1011 = vmatpush3.bf16.msra.mxu1 %v1019_v3 }
  0x10   :  { %928 = vmatprep.subr.bf16.mxu0 %v1020_v5  ;;  %1004 = vmatprep.subr.bf16.mxu1 %v1020_v5 }
  0x13   :  { %929 = vmatpush3.bf16.msra.mxu0 %v1020_v5  ;;  %1012 = vmatpush3.bf16.msra.mxu1 %v1020_v5 }
  0x14   :  { %930 = vmatprep.subr.bf16.mxu0 %v1021_v6  ;;  %1005 = vmatprep.subr.bf16.mxu1 %v1021_v6 }
  0x17   :  { %931 = vmatpush3.bf16.msra.mxu0 %v1021_v6  ;;  %1013 = vmatpush3.bf16.msra.mxu1 %v1021_v6 }
  0x18   :  { %932 = vmatprep.subr.bf16.mxu0 %v1022_v7  ;;  %1006 = vmatprep.subr.bf16.mxu1 %v1022_v7 }
  0x1b   :  { %933 = vmatpush3.bf16.msra.mxu0 %v1022_v7  ;;  %1014 = vmatpush3.bf16.msra.mxu1 %v1022_v7 }
  0x1c   :  { %934 = vmatprep.subr.bf16.mxu0 %v1023_v8  ;;  %1007 = vmatprep.subr.bf16.mxu1 %v1023_v8 }
  0x1f   :  { %935 = vmatpush3.bf16.msra.mxu0 %v1023_v8  ;;  %1015 = vmatpush3.bf16.msra.mxu1 %v1023_v8 }
  0x22   :  { %937 = vmatmul.mubr.bf16.vlgmr.msra.gmra.mrb[0].mxu0 %v1025_v10  ;;  %969 = vmatmul.mubr.bf16.vlgmr.msra.gmra.mrb[0].mxu1 %v1041_v12 }
  0x23   :  { %940 = vmatprep.mubr.bf16.mxu0 %v1026_v11  ;;  %972 = vmatprep.mubr.bf16.mxu1 %v1042_v13 }
  0x2a   :  { %941 = vmatmul.mubr.bf16.gmra.mrb[4].mxu0 %v1027_v14  ;;  %973 = vmatmul.mubr.bf16.gmra.mrb[4].mxu1 %v1043_v16 }
  0x2b   :  { %944 = vmatprep.mubr.bf16.mxu0 %v1028_v15  ;;  %976 = vmatprep.mubr.bf16.mxu1 %v1044_v17 }
  0x32   :  { %945 = vmatmul.mubr.bf16.gmra.mrb[8].mxu0 %v1029_v18  ;;  %977 = vmatmul.mubr.bf16.gmra.mrb[8].mxu1 %v1045_v19 }
  0x33   :  { %948 = vmatprep.mubr.bf16.mxu0 %v1030_v20  ;;  %980 = vmatprep.mubr.bf16.mxu1 %v1046_v21 }
  0x3a   :  { %949 = vmatmul.mubr.bf16.gmra.mrb[12].mxu0 %v1031_v22  ;;  %981 = vmatmul.mubr.bf16.gmra.mrb[12].mxu1 %v1047_v23 }
  0x3b   :  { %952 = vmatprep.mubr.bf16.mxu0 %v1032_v24  ;;  %984 = vmatprep.mubr.bf16.mxu1 %v1048_v25 }
  0x42   :  { %953 = vmatmul.mubr.bf16.gmra.mrb[16].mxu0 %v1033_v26  ;;  %985 = vmatmul.mubr.bf16.gmra.mrb[16].mxu1 %v1049_v27 }
  0x43   :  { %956 = vmatprep.mubr.bf16.mxu0 %v1034_v28  ;;  %988 = vmatprep.mubr.bf16.mxu1 %v1050_v29 }
  0x4a   :  { %957 = vmatmul.mubr.bf16.gmra.mrb[20].mxu0 %v1035_v30  ;;  %989 = vmatmul.mubr.bf16.gmra.mrb[20].mxu1 %v1051_v31 }
  0x4b   :  { %960 = vmatprep.mubr.bf16.mxu0 %v1036_v32  ;;  %992 = vmatprep.mubr.bf16.mxu1 %v1052_v33 }
  0x52   :  { %961 = vmatmul.mubr.bf16.gmra.mrb[24].mxu0 %v1037_v34  ;;  %993 = vmatmul.mubr.bf16.gmra.mrb[24].mxu1 %v1053_v35 }
  0x53   :  { %964 = vmatprep.mubr.bf16.mxu0 %v1038_v36  ;;  %996 = vmatprep.mubr.bf16.mxu1 %v1054_v37 }
  0x5a   :  { %965 = vmatmul.mubr.bf16.gmra.mrb[28].mxu0 %v1039_v38  ;;  %997 = vmatmul.mubr.bf16.gmra.mrb[28].mxu1 %v1055_v39 }
  0xf5   :  { %v938_v40 = vpop.f32.mrb[0].mxu0  ;;  %v1196_v41 = vpop.f32.mrb[0].mxu1 }
  0xf6   :  { %v368_v42 = vpop.f32.mrb[1].mxu0  ;;  %v1198_v43 = vpop.f32.mrb[1].mxu1  ;;  %v694_v51 = vmul.f32 %v938_v40, %v938_v40 }
  0xf7   :  { %v939_v44 = vpop.f32.mrb[2].mxu0  ;;  %v1200_v45 = vpop.f32.mrb[2].mxu1  ;;  %v692_v48 = vmul.f32 %v368_v42, %v368_v42 }
  0xf8   :  { %v371_v46 = vpop.f32.mrb[3].mxu0  ;;  %v1202_v47 = vpop.f32.mrb[3].mxu1  ;;  %v695_v54 = vmul.f32 %v939_v44, %v939_v44 }
  0xf9   :  { %v623_v49 = vadd.f32 %v371_v46, %v368_v42  ;;  %v693_v50 = vmul.f32 %v371_v46, %v371_v46 }
  0xfb   :  { %v624_v52 = vadd.f32 %v938_v40, %v623_v49  ;;  %v756_v53 = vadd.f32 %v693_v50, %v692_v48 }
  0xfd   :  { %v757_v55 = vadd.f32 %v756_v53, %v694_v51  ;;  %v942_v56 = vpop.f32.mrb[4].mxu0  ;;  %v625_v57 = vadd.f32 %v939_v44, %v624_v52  ;;  %v1204_v58 = vpop.f32.mrb[4].mxu1 }
  0xfe   :  { %v384_v59 = vpop.f32.mrb[5].mxu0  ;;  %v1206_v60 = vpop.f32.mrb[5].mxu1  ;;  %v698_v7 = vmul.f32 %v942_v56, %v942_v56 }
  0xff   :  { %v626_v61 = vadd.f32 %v625_v57, %v384_v59  ;;  %v696_v62 = vmul.f32 %v384_v59, %v384_v59  ;;  %v758_v63 = vadd.f32 %v757_v55, %v695_v54  ;;  %v943_v0 = vpop.f32.mrb[6].mxu0  ;;  %v1208_v1 = vpop.f32.mrb[6].mxu1 }
 0x100   :  { %v387_v2 = vpop.f32.mrb[7].mxu0  ;;  %v1210_v3 = vpop.f32.mrb[7].mxu1  ;;  %v699_v10 = vmul.f32 %v943_v0, %v943_v0 }
 0x101   :  { %v759_v4 = vadd.f32 %v758_v63, %v696_v62  ;;  %v627_v5 = vadd.f32 %v626_v61, %v387_v2  ;;  %v697_v6 = vmul.f32 %v387_v2, %v387_v2 }
 0x103   :  { %v628_v8 = vadd.f32 %v942_v56, %v627_v5  ;;  %v760_v9 = vadd.f32 %v759_v4, %v697_v6 }
 0x105   :  { %v761_v11 = vadd.f32 %v760_v9, %v698_v7  ;;  %v946_v12 = vpop.f32.mrb[8].mxu0  ;;  %v629_v13 = vadd.f32 %v943_v0, %v628_v8  ;;  %v1212_v14 = vpop.f32.mrb[8].mxu1 }
 0x106   :  { %v400_v15 = vpop.f32.mrb[9].mxu0  ;;  %v1214_v16 = vpop.f32.mrb[9].mxu1  ;;  %v702_v27 = vmul.f32 %v946_v12, %v946_v12 }
 0x107   :  { %v630_v17 = vadd.f32 %v629_v13, %v400_v15  ;;  %v700_v18 = vmul.f32 %v400_v15, %v400_v15  ;;  %v762_v19 = vadd.f32 %v761_v11, %v699_v10  ;;  %v947_v20 = vpop.f32.mrb[10].mxu0  ;;  %v1216_v21 = vpop.f32.mrb[10].mxu1 }
 0x108   :  { %v403_v22 = vpop.f32.mrb[11].mxu0  ;;  %v1218_v23 = vpop.f32.mrb[11].mxu1  ;;  %v703_v30 = vmul.f32 %v947_v20, %v947_v20 }
 0x109   :  { %v763_v24 = vadd.f32 %v762_v19, %v700_v18  ;;  %v631_v25 = vadd.f32 %v630_v17, %v403_v22  ;;  %v701_v26 = vmul.f32 %v403_v22, %v403_v22 }
 0x10b   :  { %v632_v28 = vadd.f32 %v946_v12, %v631_v25  ;;  %v764_v29 = vadd.f32 %v763_v24, %v701_v26 }
 0x10d   :  { %v765_v31 = vadd.f32 %v764_v29, %v702_v27  ;;  %v950_v32 = vpop.f32.mrb[12].mxu0  ;;  %v633_v33 = vadd.f32 %v947_v20, %v632_v28  ;;  %v1220_v34 = vpop.f32.mrb[12].mxu1 }
 0x10e   :  { %v416_v35 = vpop.f32.mrb[13].mxu0  ;;  %v1222_v36 = vpop.f32.mrb[13].mxu1  ;;  %v706_v51 = vmul.f32 %v950_v32, %v950_v32 }
 0x10f   :  { %v634_v37 = vadd.f32 %v633_v33, %v416_v35  ;;  %v704_v38 = vmul.f32 %v416_v35, %v416_v35  ;;  %v766_v39 = vadd.f32 %v765_v31, %v703_v30  ;;  %v951_v40 = vpop.f32.mrb[14].mxu0  ;;  %v1224_v42 = vpop.f32.mrb[14].mxu1 }
 0x110   :  { %v419_v44 = vpop.f32.mrb[15].mxu0  ;;  %v1226_v46 = vpop.f32.mrb[15].mxu1  ;;  %v707_v54 = vmul.f32 %v951_v40, %v951_v40 }
 0x111   :  { %v767_v48 = vadd.f32 %v766_v39, %v704_v38  ;;  %v635_v49 = vadd.f32 %v634_v37, %v419_v44  ;;  %v705_v50 = vmul.f32 %v419_v44, %v419_v44 }
 0x113   :  { %v636_v52 = vadd.f32 %v950_v32, %v635_v49  ;;  %v768_v53 = vadd.f32 %v767_v48, %v705_v50 }
 0x115   :  { %v769_v55 = vadd.f32 %v768_v53, %v706_v51  ;;  %v954_v56 = vpop.f32.mrb[16].mxu0  ;;  %v637_v57 = vadd.f32 %v951_v40, %v636_v52  ;;  %v1228_v59 = vpop.f32.mrb[16].mxu1 }
 0x116   :  { %v432_v61 = vpop.f32.mrb[17].mxu0  ;;  %v1230_v62 = vpop.f32.mrb[17].mxu1  ;;  %v710_v11 = vmul.f32 %v954_v56, %v954_v56 }
 0x117   :  { %v638_v63 = vadd.f32 %v637_v57, %v432_v61  ;;  %v708_v0 = vmul.f32 %v432_v61, %v432_v61  ;;  %v770_v2 = vadd.f32 %v769_v55, %v707_v54  ;;  %v955_v4 = vpop.f32.mrb[18].mxu0  ;;  %v1232_v5 = vpop.f32.mrb[18].mxu1 }
 0x118   :  { %v435_v6 = vpop.f32.mrb[19].mxu0  ;;  %v1234_v7 = vpop.f32.mrb[19].mxu1  ;;  %v711_v15 = vmul.f32 %v955_v4, %v955_v4 }
 0x119   :  { %v771_v8 = vadd.f32 %v770_v2, %v708_v0  ;;  %v639_v9 = vadd.f32 %v638_v63, %v435_v6  ;;  %v709_v10 = vmul.f32 %v435_v6, %v435_v6 }
 0x11b   :  { %v640_v12 = vadd.f32 %v954_v56, %v639_v9  ;;  %v772_v13 = vadd.f32 %v771_v8, %v709_v10 }
 0x11d   :  { %v773_v17 = vadd.f32 %v772_v13, %v710_v11  ;;  %v958_v18 = vpop.f32.mrb[20].mxu0  ;;  %v641_v19 = vadd.f32 %v955_v4, %v640_v12  ;;  %v1236_v20 = vpop.f32.mrb[20].mxu1 }
 0x11e   :  { %v448_v22 = vpop.f32.mrb[21].mxu0  ;;  %v1238_v24 = vpop.f32.mrb[21].mxu1  ;;  %v714_v37 = vmul.f32 %v958_v18, %v958_v18 }
 0x11f   :  { %v642_v25 = vadd.f32 %v641_v19, %v448_v22  ;;  %v712_v26 = vmul.f32 %v448_v22, %v448_v22  ;;  %v774_v27 = vadd.f32 %v773_v17, %v711_v15  ;;  %v959_v28 = vpop.f32.mrb[22].mxu0  ;;  %v1240_v29 = vpop.f32.mrb[22].mxu1 }
 0x120   :  { %v451_v30 = vpop.f32.mrb[23].mxu0  ;;  %v1242_v31 = vpop.f32.mrb[23].mxu1  ;;  %v715_v40 = vmul.f32 %v959_v28, %v959_v28 }
 0x121   :  { %v775_v32 = vadd.f32 %v774_v27, %v712_v26  ;;  %v643_v33 = vadd.f32 %v642_v25, %v451_v30  ;;  %v713_v35 = vmul.f32 %v451_v30, %v451_v30 }
 0x123   :  { %v644_v38 = vadd.f32 %v958_v18, %v643_v33  ;;  %v776_v39 = vadd.f32 %v775_v32, %v713_v35 }
 0x125   :  { %v777_v44 = vadd.f32 %v776_v39, %v714_v37  ;;  %v962_v48 = vpop.f32.mrb[24].mxu0  ;;  %v645_v49 = vadd.f32 %v959_v28, %v644_v38  ;;  %v1244_v50 = vpop.f32.mrb[24].mxu1 }
 0x126   :  { %v464_v51 = vpop.f32.mrb[25].mxu0  ;;  %v1246_v52 = vpop.f32.mrb[25].mxu1  ;;  %v718_v6 = vmul.f32 %v962_v48, %v962_v48 }
 0x127   :  { %v646_v53 = vadd.f32 %v645_v49, %v464_v51  ;;  %v716_v54 = vmul.f32 %v464_v51, %v464_v51  ;;  %v778_v55 = vadd.f32 %v777_v44, %v715_v40  ;;  %v963_v56 = vpop.f32.mrb[26].mxu0  ;;  %v1248_v57 = vpop.f32.mrb[26].mxu1  ;;  %v724_v49 = vmul.f32 %v1198_v43, %v1198_v43 }
 0x128   :  { %v467_v61 = vpop.f32.mrb[27].mxu0  ;;  %v1250_v63 = vpop.f32.mrb[27].mxu1  ;;  %v719_v10 = vmul.f32 %v963_v56, %v963_v56 }
 0x129   :  { %v779_v0 = vadd.f32 %v778_v55, %v716_v54  ;;  %v647_v2 = vadd.f32 %v646_v53, %v467_v61  ;;  %v717_v4 = vmul.f32 %v467_v61, %v467_v61  ;;  %v726_v61 = vmul.f32 %v1196_v41, %v1196_v41 }
 0x12b   :  { %v648_v8 = vadd.f32 %v962_v48, %v647_v2  ;;  %v780_v9 = vadd.f32 %v779_v0, %v717_v4  ;;  %v727_v4 = vmul.f32 %v1200_v45, %v1200_v45 }
 0x12d   :  { %v781_v11 = vadd.f32 %v780_v9, %v718_v6  ;;  %v966_v12 = vpop.f32.mrb[28].mxu0  ;;  %v649_v13 = vadd.f32 %v963_v56, %v648_v8  ;;  %v1252_v15 = vpop.f32.mrb[28].mxu1  ;;  %v725_v56 = vmul.f32 %v1202_v47, %v1202_v47 }
 0x12e   :  { %v480_v17 = vpop.f32.mrb[29].mxu0  ;;  %v1254_v18 = vpop.f32.mrb[29].mxu1  ;;  %v722_v37 = vmul.f32 %v966_v12, %v966_v12 }
 0x12f   :  { %v650_v19 = vadd.f32 %v649_v13, %v480_v17  ;;  %v720_v22 = vmul.f32 %v480_v17, %v480_v17  ;;  %v782_v25 = vadd.f32 %v781_v11, %v719_v10  ;;  %v967_v26 = vpop.f32.mrb[30].mxu0  ;;  %v1256_v27 = vpop.f32.mrb[30].mxu1 }
 0x130   :  { %v483_v28 = vpop.f32.mrb[31].mxu0  ;;  %v1258_v30 = vpop.f32.mrb[31].mxu1  ;;  %v723_v40 = vmul.f32 %v967_v26, %v967_v26 }
 0x131   :  { %v783_v32 = vadd.f32 %v782_v25, %v720_v22  ;;  %v651_v33 = vadd.f32 %v650_v19, %v483_v28  ;;  %v721_v35 = vmul.f32 %v483_v28, %v483_v28 }
 0x133   :  { %v652_v38 = vadd.f32 %v966_v12, %v651_v33  ;;  %v784_v39 = vadd.f32 %v783_v32, %v721_v35  ;;  %v729_v12 = vmul.f32 %v1210_v3, %v1210_v3  ;;  %v733_v32 = vmul.f32 %v1218_v23, %v1218_v23 }
 0x135   :  { %v785_v44 = vadd.f32 %v784_v39, %v722_v37  ;;  %v653_v48 = vadd.f32 %v967_v26, %v652_v38 }
 0x137   :  { %v654_v51 = vadd.f32 %v653_v48, %v1198_v43  ;;  %v786_v53 = vadd.f32 %v785_v44, %v723_v40  ;;  %v728_v43 = vmul.f32 %v1206_v60, %v1206_v60  ;;  %v737_v48 = vmul.f32 %v1226_v46, %v1226_v46 }
 0x139   :  { %v787_v54 = vadd.f32 %v786_v53, %v724_v49  ;;  %v655_v55 = vadd.f32 %v654_v51, %v1202_v47 }
 0x13b   :  { %v656_v0 = vadd.f32 %v1196_v41, %v655_v55  ;;  %v788_v2 = vadd.f32 %v787_v54, %v725_v56  ;;  %v730_v41 = vmul.f32 %v1204_v58, %v1204_v58 }
 0x13d   :  { %v789_v6 = vadd.f32 %v788_v2, %v726_v61  ;;  %v657_v8 = vadd.f32 %v1200_v45, %v656_v0  ;;  %v731_v45 = vmul.f32 %v1208_v1, %v1208_v1  ;;  %v741_v0 = vmul.f32 %v1234_v7, %v1234_v7 }
 0x13f   :  { %v658_v9 = vadd.f32 %v657_v8, %v1206_v60  ;;  %v790_v10 = vadd.f32 %v789_v6, %v727_v4  ;;  %v732_v60 = vmul.f32 %v1214_v16, %v1214_v16 }
 0x141   :  { %v791_v11 = vadd.f32 %v790_v10, %v728_v43  ;;  %v659_v47 = vadd.f32 %v658_v9, %v1210_v3 }
 0x143   :  { %v660_v13 = vadd.f32 %v1204_v58, %v659_v47  ;;  %v792_v17 = vadd.f32 %v791_v11, %v729_v12  ;;  %v734_v58 = vmul.f32 %v1212_v14, %v1212_v14  ;;  %v745_v11 = vmul.f32 %v1242_v31, %v1242_v31 }
 0x145   :  { %v793_v19 = vadd.f32 %v792_v17, %v730_v41  ;;  %v661_v22 = vadd.f32 %v1208_v1, %v660_v13  ;;  %v735_v1 = vmul.f32 %v1216_v21, %v1216_v21 }
 0x147   :  { %v662_v25 = vadd.f32 %v661_v22, %v1214_v16  ;;  %v794_v26 = vadd.f32 %v793_v19, %v731_v45  ;;  %v736_v16 = vmul.f32 %v1222_v36, %v1222_v36  ;;  %v749_v22 = vmul.f32 %v1250_v63, %v1250_v63 }
 0x149   :  { %v795_v28 = vadd.f32 %v794_v26, %v732_v60  ;;  %v663_v3 = vadd.f32 %v662_v25, %v1218_v23 }
 0x14b   :  { %v664_v33 = vadd.f32 %v1212_v14, %v663_v3  ;;  %v796_v35 = vadd.f32 %v795_v28, %v733_v32  ;;  %v738_v14 = vmul.f32 %v1220_v34, %v1220_v34 }
 0x14d   :  { %v797_v37 = vadd.f32 %v796_v35, %v734_v58  ;;  %v665_v38 = vadd.f32 %v1216_v21, %v664_v33  ;;  %v739_v21 = vmul.f32 %v1224_v42, %v1224_v42  ;;  %v753_v33 = vmul.f32 %v1258_v30, %v1258_v30 }
 0x14f   :  { %v666_v39 = vadd.f32 %v665_v38, %v1222_v36  ;;  %v798_v40 = vadd.f32 %v797_v37, %v735_v1  ;;  %v740_v36 = vmul.f32 %v1230_v62, %v1230_v62 }
 0x151   :  { %v799_v44 = vadd.f32 %v798_v40, %v736_v16  ;;  %v667_v23 = vadd.f32 %v666_v39, %v1226_v46  ;;  %v825_v39 = vlaneseq }
 0x153   :  { %v668_v49 = vadd.f32 %v1220_v34, %v667_v23  ;;  %v800_v51 = vadd.f32 %v799_v44, %v737_v48  ;;  %v742_v34 = vmul.f32 %v1228_v59, %v1228_v59 }
 0x155   :  { %v801_v53 = vadd.f32 %v800_v51, %v738_v14  ;;  %v669_v54 = vadd.f32 %v1224_v42, %v668_v49  ;;  %v743_v42 = vmul.f32 %v1232_v5, %v1232_v5 }
 0x157   :  { %v670_v55 = vadd.f32 %v669_v54, %v1230_v62  ;;  %v802_v56 = vadd.f32 %v801_v53, %v739_v21  ;;  %v744_v62 = vmul.f32 %v1238_v24, %v1238_v24 }
 0x159   :  { %v803_v61 = vadd.f32 %v802_v56, %v740_v36  ;;  %v671_v46 = vadd.f32 %v670_v55, %v1234_v7 }
 0x15b   :  { %v672_v2 = vadd.f32 %v1228_v59, %v671_v46  ;;  %v804_v4 = vadd.f32 %v803_v61, %v741_v0  ;;  %v746_v59 = vmul.f32 %v1236_v20, %v1236_v20 }
 0x15d   :  { %v805_v6 = vadd.f32 %v804_v4, %v742_v34  ;;  %v673_v8 = vadd.f32 %v1232_v5, %v672_v2  ;;  %v747_v5 = vmul.f32 %v1240_v29, %v1240_v29 }
 0x15f   :  { %v674_v43 = vadd.f32 %v673_v8, %v1238_v24  ;;  %v806_v9 = vadd.f32 %v805_v6, %v743_v42  ;;  %v748_v24 = vmul.f32 %v1246_v52, %v1246_v52 }
 0x161   :  { %v807_v10 = vadd.f32 %v806_v9, %v744_v62  ;;  %v675_v7 = vadd.f32 %v674_v43, %v1242_v31 }
 0x163   :  { %v676_v47 = vadd.f32 %v1236_v20, %v675_v7  ;;  %v808_v12 = vadd.f32 %v807_v10, %v745_v11  ;;  %v750_v20 = vmul.f32 %v1244_v50, %v1244_v50 }
 0x165   :  { %v809_v41 = vadd.f32 %v808_v12, %v746_v59  ;;  %v677_v13 = vadd.f32 %v1240_v29, %v676_v47  ;;  %v751_v29 = vmul.f32 %v1248_v57, %v1248_v57 }
 0x167   :  { %v678_v17 = vadd.f32 %v677_v13, %v1246_v52  ;;  %v810_v45 = vadd.f32 %v809_v41, %v747_v5  ;;  %v752_v52 = vmul.f32 %v1254_v18, %v1254_v18 }
 0x169   :  { %v811_v19 = vadd.f32 %v810_v45, %v748_v24  ;;  %v679_v31 = vadd.f32 %v678_v17, %v1250_v63 }
 0x16b   :  { %v680_v60 = vadd.f32 %v1244_v50, %v679_v31  ;;  %v812_v25 = vadd.f32 %v811_v19, %v749_v22  ;;  %v754_v50 = vmul.f32 %v1252_v15, %v1252_v15 }
 0x16d   :  { %v813_v26 = vadd.f32 %v812_v25, %v750_v20  ;;  %v681_v28 = vadd.f32 %v1248_v57, %v680_v60  ;;  %v755_v57 = vmul.f32 %v1256_v27, %v1256_v27 }
 0x16f   :  { %v682_v3 = vadd.f32 %v681_v28, %v1254_v18  ;;  %v814_v32 = vadd.f32 %v813_v26, %v751_v29 }
 0x171   :  { %v815_v58 = vadd.f32 %v814_v32, %v752_v52  ;;  %v683_v63 = vadd.f32 %v682_v3, %v1258_v30  ;;  %v826_v30 = vshrl.u32 %v825_v39, 7 }
 0x173   :  { %v684_v35 = vadd.f32 %v1252_v15, %v683_v63  ;;  %v816_v1 = vadd.f32 %v815_v58, %v753_v33  ;;  %vm827_vm0 = vcmp.eq.s32.totalorder %v826_v30, 0 }
 0x175   :  { %v685_v37 = vadd.f32 %v1256_v27, %v684_v35  ;;  %v817_v38 = vadd.f32 %v816_v1, %v754_v50 }
 0x177   :  { %v686_v18 = vrot.slane %v685_v37, 4  ;;  %v818_v16 = vadd.f32 %v817_v38, %v755_v57 }
 0x179   :  { %v687_v40 = vadd.f32 %v686_v18, %v685_v37  ;;  %v819_v44 = vrot.slane %v818_v16, 4 }
 0x17b   :  { %v688_v23 = vrot.slane %v687_v40, 2  ;;  %v820_v48 = vadd.f32 %v819_v44, %v818_v16 }
 0x17d   :  { %v689_v14 = vadd.f32 %v688_v23, %v687_v40  ;;  %v821_v49 = vrot.slane %v820_v48, 2 }
 0x17f   :  { %v690_v51 = vrot.slane %v689_v14, 1  ;;  %v822_v21 = vadd.f32 %v821_v49, %v820_v48 }
 0x181   :  { %v691_v15 = vadd.f32 %v690_v51, %v689_v14  ;;  %v823_v53 = vrot.slane %v822_v21, 1 }
 0x183   :  { %v824_v54 = vadd.f32 %v823_v53, %v822_v21  ;;  %v828_v36 = vsel %vm827_vm0, %v691_v15, 0.0 }
 0x184   :  { %829 = vst [vmem:[%s1364_s2] sm:$0xff] %v828_v36 }
 0x185   :  { %v830_v27 = vsel %vm827_vm0, %v824_v54, 0.0 }
 0x186   :  { %831 = vst [vmem:[%s1365_s3] sm:$0xff] %v830_v27 }

// kernel: bn_conv2d_leaky.3
= control target key start
LH: loop header
LB: loop body
LE: loop exit
PB: predicated region body
PF: predicated region fallthrough
CT: control target
= control target key end

     0   :  { %s1752_s1 = inlined_call_operand.vmem [shape: bf16[128,128], index: 1, kind: input, shape index: {}]   ;;  %s1753_s0 = inlined_call_operand.vmem [shape: bf16[512,128], index: 0, kind: input, shape index: {}]   ;;  %s1754_s2 = inlined_call_operand.vmem [shape: f32[1,128], index: 2, kind: input, shape index: {}]   ;;  %s1755_s3 = inlined_call_operand.vmem [shape: f32[1,128], index: 3, kind: input, shape index: {}]   ;;  %s1756_s4 = inlined_call_operand.vmem [shape: f32[512,128], index: 4, kind: output, shape index: {}]  }
   0x1   :  { %v1207_v0 = vld [vmem:[%s1752_s1] sm:$0xff]   ;;  %v1208_v1 = vld [vmem:[%s1752_s1 + $0x8] sm:$0xff]   ;;  %v1209_v2 = vld [vmem:[%s1752_s1 + $0x10] sm:$0xff]  }
   0x2   :  { %1111 = vmatprep.subr.bf16.mxu0 %v1207_v0  ;;  %1191 = vmatprep.subr.bf16.mxu1 %v1207_v0  ;;  %v1210_v3 = vld [vmem:[%s1752_s1 + $0x18] sm:$0xff]   ;;  %v1215_v4 = vld [vmem:[%s1753_s0] sm:$0xff]   ;;  %v1212_v7 = vld [vmem:[%s1752_s1 + $0x28] sm:$0xff]  }
   0x3   :  { %1112 = vmatpush3.bf16.msra.mxu0 %v1207_v0  ;;  %1199 = vmatpush3.bf16.msra.mxu1 %v1207_v0  ;;  %v1216_v5 = vld [vmem:[%s1753_s0 + $0x80] sm:$0xff]   ;;  %v1213_v8 = vld [vmem:[%s1752_s1 + $0x30] sm:$0xff]   ;;  %v1214_v9 = vld [vmem:[%s1752_s1 + $0x38] sm:$0xff]  }
   0x4   :  { %1113 = vmatprep.subr.bf16.mxu0 %v1208_v1  ;;  %1192 = vmatprep.subr.bf16.mxu1 %v1208_v1  ;;  %v1211_v6 = vld [vmem:[%s1752_s1 + $0x20] sm:$0xff]   ;;  %v1217_v10 = vld [vmem:[%s1753_s0 + $0x8] sm:$0xff]   ;;  %v1219_v12 = vld [vmem:[%s1753_s0 + $0x10] sm:$0xff]  }
   0x5   :  { %1127 = vmatprep.mubr.bf16.mxu0 %v1215_v4  ;;  %1159 = vmatprep.mubr.bf16.mxu1 %v1216_v5  ;;  %v1218_v11 = vld [vmem:[%s1753_s0 + $0x88] sm:$0xff]   ;;  %v1220_v13 = vld [vmem:[%s1753_s0 + $0x90] sm:$0xff]   ;;  %v1221_v14 = vld [vmem:[%s1753_s0 + $0x18] sm:$0xff]  }
   0x6   :  { %v1222_v15 = vld [vmem:[%s1753_s0 + $0x98] sm:$0xff]   ;;  %v1223_v16 = vld [vmem:[%s1753_s0 + $0x20] sm:$0xff]   ;;  %v1225_v18 = vld [vmem:[%s1753_s0 + $0x28] sm:$0xff]  }
   0x7   :  { %1114 = vmatpush3.bf16.msra.mxu0 %v1208_v1  ;;  %1200 = vmatpush3.bf16.msra.mxu1 %v1208_v1  ;;  %v1224_v17 = vld [vmem:[%s1753_s0 + $0xa0] sm:$0xff]   ;;  %v1226_v19 = vld [vmem:[%s1753_s0 + $0xa8] sm:$0xff]   ;;  %v1227_v20 = vld [vmem:[%s1753_s0 + $0x30] sm:$0xff]  }
   0x8   :  { %1115 = vmatprep.subr.bf16.mxu0 %v1209_v2  ;;  %1193 = vmatprep.subr.bf16.mxu1 %v1209_v2  ;;  %v1228_v21 = vld [vmem:[%s1753_s0 + $0xb0] sm:$0xff]   ;;  %v1229_v22 = vld [vmem:[%s1753_s0 + $0x38] sm:$0xff]   ;;  %v1231_v24 = vld [vmem:[%s1753_s0 + $0x40] sm:$0xff]  }
   0x9   :  { %v1230_v23 = vld [vmem:[%s1753_s0 + $0xb8] sm:$0xff]   ;;  %v1232_v25 = vld [vmem:[%s1753_s0 + $0xc0] sm:$0xff]   ;;  %v1233_v26 = vld [vmem:[%s1753_s0 + $0x48] sm:$0xff]  }
   0xa   :  { %v1234_v27 = vld [vmem:[%s1753_s0 + $0xc8] sm:$0xff]   ;;  %v1235_v28 = vld [vmem:[%s1753_s0 + $0x50] sm:$0xff]   ;;  %v1237_v30 = vld [vmem:[%s1753_s0 + $0x58] sm:$0xff]  }
   0xb   :  { %1116 = vmatpush3.bf16.msra.mxu0 %v1209_v2  ;;  %1201 = vmatpush3.bf16.msra.mxu1 %v1209_v2  ;;  %v1236_v29 = vld [vmem:[%s1753_s0 + $0xd0] sm:$0xff]   ;;  %v1238_v31 = vld [vmem:[%s1753_s0 + $0xd8] sm:$0xff]   ;;  %v1239_v32 = vld [vmem:[%s1753_s0 + $0x60] sm:$0xff]  }
   0xc   :  { %1117 = vmatprep.subr.bf16.mxu0 %v1210_v3  ;;  %1194 = vmatprep.subr.bf16.mxu1 %v1210_v3  ;;  %v1240_v33 = vld [vmem:[%s1753_s0 + $0xe0] sm:$0xff]   ;;  %v1241_v34 = vld [vmem:[%s1753_s0 + $0x68] sm:$0xff]   ;;  %v1243_v36 = vld [vmem:[%s1753_s0 + $0x70] sm:$0xff]  }
   0xd   :  { %v1242_v35 = vld [vmem:[%s1753_s0 + $0xe8] sm:$0xff]   ;;  %v1244_v37 = vld [vmem:[%s1753_s0 + $0xf0] sm:$0xff]   ;;  %v1245_v38 = vld [vmem:[%s1753_s0 + $0x78] sm:$0xff]  }
   0xe   :  { %v1246_v39 = vld [vmem:[%s1753_s0 + $0xf8] sm:$0xff]   ;;  %v1395_v40 = vld [vmem:[%s1754_s2] ss:$0 sm:$0xff] }
   0xf   :  { %1118 = vmatpush3.bf16.msra.mxu0 %v1210_v3  ;;  %1202 = vmatpush3.bf16.msra.mxu1 %v1210_v3  ;;  %v1400_v42 = vld [vmem:[%s1755_s3] ss:$0 sm:$0xff] }
  0x10   :  { %1119 = vmatprep.subr.bf16.mxu0 %v1211_v6  ;;  %1195 = vmatprep.subr.bf16.mxu1 %v1211_v6 }
  0x13   :  { %1120 = vmatpush3.bf16.msra.mxu0 %v1211_v6  ;;  %1203 = vmatpush3.bf16.msra.mxu1 %v1211_v6 }
  0x14   :  { %1121 = vmatprep.subr.bf16.mxu0 %v1212_v7  ;;  %1196 = vmatprep.subr.bf16.mxu1 %v1212_v7 }
  0x17   :  { %1122 = vmatpush3.bf16.msra.mxu0 %v1212_v7  ;;  %1204 = vmatpush3.bf16.msra.mxu1 %v1212_v7 }
  0x18   :  { %1123 = vmatprep.subr.bf16.mxu0 %v1213_v8  ;;  %1197 = vmatprep.subr.bf16.mxu1 %v1213_v8 }
  0x1b   :  { %1124 = vmatpush3.bf16.msra.mxu0 %v1213_v8  ;;  %1205 = vmatpush3.bf16.msra.mxu1 %v1213_v8 }
  0x1c   :  { %1125 = vmatprep.subr.bf16.mxu0 %v1214_v9  ;;  %1198 = vmatprep.subr.bf16.mxu1 %v1214_v9 }
  0x1f   :  { %1126 = vmatpush3.bf16.msra.mxu0 %v1214_v9  ;;  %1206 = vmatpush3.bf16.msra.mxu1 %v1214_v9 }
  0x22   :  { %1128 = vmatmul.mubr.bf16.vlgmr.msra.gmra.mrb[0].mxu0 %v1217_v10  ;;  %1160 = vmatmul.mubr.bf16.vlgmr.msra.gmra.mrb[0].mxu1 %v1218_v11 }
  0x23   :  { %1131 = vmatprep.mubr.bf16.mxu0 %v1219_v12  ;;  %1163 = vmatprep.mubr.bf16.mxu1 %v1220_v13 }
  0x2a   :  { %1132 = vmatmul.mubr.bf16.gmra.mrb[4].mxu0 %v1221_v14  ;;  %1164 = vmatmul.mubr.bf16.gmra.mrb[4].mxu1 %v1222_v15 }
  0x2b   :  { %1135 = vmatprep.mubr.bf16.mxu0 %v1223_v16  ;;  %1167 = vmatprep.mubr.bf16.mxu1 %v1224_v17 }
  0x32   :  { %1136 = vmatmul.mubr.bf16.gmra.mrb[8].mxu0 %v1225_v18  ;;  %1168 = vmatmul.mubr.bf16.gmra.mrb[8].mxu1 %v1226_v19 }
  0x33   :  { %1139 = vmatprep.mubr.bf16.mxu0 %v1227_v20  ;;  %1171 = vmatprep.mubr.bf16.mxu1 %v1228_v21 }
  0x3a   :  { %1140 = vmatmul.mubr.bf16.gmra.mrb[12].mxu0 %v1229_v22  ;;  %1172 = vmatmul.mubr.bf16.gmra.mrb[12].mxu1 %v1230_v23 }
  0x3b   :  { %1143 = vmatprep.mubr.bf16.mxu0 %v1231_v24  ;;  %1175 = vmatprep.mubr.bf16.mxu1 %v1232_v25 }
  0x42   :  { %1144 = vmatmul.mubr.bf16.gmra.mrb[16].mxu0 %v1233_v26  ;;  %1176 = vmatmul.mubr.bf16.gmra.mrb[16].mxu1 %v1234_v27 }
  0x43   :  { %1147 = vmatprep.mubr.bf16.mxu0 %v1235_v28  ;;  %1179 = vmatprep.mubr.bf16.mxu1 %v1236_v29 }
  0x4a   :  { %1148 = vmatmul.mubr.bf16.gmra.mrb[20].mxu0 %v1237_v30  ;;  %1180 = vmatmul.mubr.bf16.gmra.mrb[20].mxu1 %v1238_v31 }
  0x4b   :  { %1151 = vmatprep.mubr.bf16.mxu0 %v1239_v32  ;;  %1183 = vmatprep.mubr.bf16.mxu1 %v1240_v33 }
  0x52   :  { %1152 = vmatmul.mubr.bf16.gmra.mrb[24].mxu0 %v1241_v34  ;;  %1184 = vmatmul.mubr.bf16.gmra.mrb[24].mxu1 %v1242_v35 }
  0x53   :  { %1155 = vmatprep.mubr.bf16.mxu0 %v1243_v36  ;;  %1187 = vmatprep.mubr.bf16.mxu1 %v1244_v37 }
  0x5a   :  { %1156 = vmatmul.mubr.bf16.gmra.mrb[28].mxu0 %v1245_v38  ;;  %1188 = vmatmul.mubr.bf16.gmra.mrb[28].mxu1 %v1246_v39 }
  0xf5   :  { %v1129_v41 = vpop.f32.mrb[0].mxu0  ;;  %v1161_v43 = vpop.f32.mrb[0].mxu1 }
  0xf6   :  { %v636_v44 = vmul.f32 %v1129_v41, %v1395_v40  ;;  %v668_v45 = vmul.f32 %v1161_v43, %v1395_v40  ;;  %v372_v46 = vpop.f32.mrb[1].mxu0  ;;  %v500_v47 = vpop.f32.mrb[1].mxu1 }
  0xf7   :  { %v634_v48 = vmul.f32 %v1395_v40, %v372_v46  ;;  %v666_v49 = vmul.f32 %v1395_v40, %v500_v47  ;;  %v1130_v50 = vpop.f32.mrb[2].mxu0  ;;  %v1162_v51 = vpop.f32.mrb[2].mxu1 }
  0xf8   :  { %v707_v52 = vadd.f32 %v1400_v42, %v636_v44  ;;  %v739_v53 = vadd.f32 %v1400_v42, %v668_v45  ;;  %v637_v54 = vmul.f32 %v1130_v50, %v1395_v40  ;;  %v669_v55 = vmul.f32 %v1162_v51, %v1395_v40  ;;  %v375_v56 = vpop.f32.mrb[3].mxu0  ;;  %v503_v57 = vpop.f32.mrb[3].mxu1 }
  0xf9   :  { %v705_v58 = vadd.f32 %v1400_v42, %v634_v48  ;;  %v737_v59 = vadd.f32 %v1400_v42, %v666_v49  ;;  %v635_v60 = vmul.f32 %v1395_v40, %v375_v56  ;;  %v667_v61 = vmul.f32 %v1395_v40, %v503_v57 }
  0xfa   :  { %vm771_vm0 = vcmp.ge.f32.partialorder %v707_v52, 0.0  ;;  %v835_v62 = vmul.f32 0.01, %v707_v52  ;;  %vm803_vm1 = vcmp.ge.f32.partialorder %v739_v53, 0.0  ;;  %v867_v63 = vmul.f32 0.01, %v739_v53 }
  0xfb   :  { %vm769_vm2 = vcmp.ge.f32.partialorder %v705_v58, 0.0  ;;  %v833_v0 = vmul.f32 0.01, %v705_v58  ;;  %vm801_vm3 = vcmp.ge.f32.partialorder %v737_v59, 0.0  ;;  %v865_v1 = vmul.f32 0.01, %v737_v59 }
  0xfc   :  { %v899_v2 = vsel %vm771_vm0, %v707_v52, %v835_v62  ;;  %v931_v3 = vsel %vm803_vm1, %v739_v53, %v867_v63  ;;  %v708_v4 = vadd.f32 %v1400_v42, %v637_v54  ;;  %v740_v5 = vadd.f32 %v1400_v42, %v669_v55 }
  0xfd   :  { %963 = vst [vmem:[%s1756_s4 + $0x10] sm:$0xff] %v899_v2  ;;  %995 = vst [vmem:[%s1756_s4 + $0x110] sm:$0xff] %v931_v3  ;;  %v897_v6 = vsel %vm769_vm2, %v705_v58, %v833_v0  ;;  %v929_v7 = vsel %vm801_vm3, %v737_v59, %v865_v1  ;;  %v706_v8 = vadd.f32 %v1400_v42, %v635_v60  ;;  %v1133_v10 = vpop.f32.mrb[4].mxu0  ;;  %v1165_v11 = vpop.f32.mrb[4].mxu1 }
  0xfe   :  { %v738_v9 = vadd.f32 %v1400_v42, %v667_v61  ;;  %961 = vst [vmem:[%s1756_s4] sm:$0xff] %v897_v6  ;;  %993 = vst [vmem:[%s1756_s4 + $0x100] sm:$0xff] %v929_v7  ;;  %vm772_vm4 = vcmp.ge.f32.partialorder %v708_v4, 0.0  ;;  %v836_v12 = vmul.f32 0.01, %v708_v4  ;;  %vm804_vm5 = vcmp.ge.f32.partialorder %v740_v5, 0.0  ;;  %v388_v20 = vpop.f32.mrb[5].mxu0 }
  0xff   :  { %v868_v13 = vmul.f32 0.01, %v740_v5  ;;  %vm770_vm6 = vcmp.ge.f32.partialorder %v706_v8, 0.0  ;;  %v834_v14 = vmul.f32 0.01, %v706_v8  ;;  %v640_v18 = vmul.f32 %v1133_v10, %v1395_v40  ;;  %v516_v21 = vpop.f32.mrb[5].mxu1 }
 0x100   :  { %vm802_vm7 = vcmp.ge.f32.partialorder %v738_v9, 0.0  ;;  %v866_v15 = vmul.f32 0.01, %v738_v9  ;;  %v900_v16 = vsel %vm772_vm4, %v708_v4, %v836_v12  ;;  %v672_v19 = vmul.f32 %v1165_v11, %v1395_v40  ;;  %v1134_v26 = vpop.f32.mrb[6].mxu0  ;;  %v1166_v27 = vpop.f32.mrb[6].mxu1 }
 0x101   :  { %v932_v17 = vsel %vm804_vm5, %v740_v5, %v868_v13  ;;  %964 = vst [vmem:[%s1756_s4 + $0x18] sm:$0xff] %v900_v16  ;;  %v898_v22 = vsel %vm770_vm6, %v706_v8, %v834_v14  ;;  %v638_v24 = vmul.f32 %v1395_v40, %v388_v20  ;;  %v670_v25 = vmul.f32 %v1395_v40, %v516_v21  ;;  %v391_v32 = vpop.f32.mrb[7].mxu0  ;;  %v519_v33 = vpop.f32.mrb[7].mxu1 }
 0x102   :  { %996 = vst [vmem:[%s1756_s4 + $0x118] sm:$0xff] %v932_v17  ;;  %v930_v23 = vsel %vm802_vm7, %v738_v9, %v866_v15  ;;  %962 = vst [vmem:[%s1756_s4 + $0x8] sm:$0xff] %v898_v22  ;;  %v711_v28 = vadd.f32 %v1400_v42, %v640_v18  ;;  %v743_v29 = vadd.f32 %v1400_v42, %v672_v19 }
 0x103   :  { %994 = vst [vmem:[%s1756_s4 + $0x108] sm:$0xff] %v930_v23  ;;  %v641_v30 = vmul.f32 %v1134_v26, %v1395_v40  ;;  %v673_v31 = vmul.f32 %v1166_v27, %v1395_v40  ;;  %v709_v34 = vadd.f32 %v1400_v42, %v638_v24  ;;  %v741_v35 = vadd.f32 %v1400_v42, %v670_v25 }
 0x104   :  { %v639_v36 = vmul.f32 %v1395_v40, %v391_v32  ;;  %v671_v37 = vmul.f32 %v1395_v40, %v519_v33  ;;  %vm775_vm8 = vcmp.ge.f32.partialorder %v711_v28, 0.0  ;;  %v839_v38 = vmul.f32 0.01, %v711_v28 }
 0x105   :  { %vm807_vm9 = vcmp.ge.f32.partialorder %v743_v29, 0.0  ;;  %v871_v39 = vmul.f32 0.01, %v743_v29  ;;  %vm773_vm10 = vcmp.ge.f32.partialorder %v709_v34, 0.0  ;;  %v837_v41 = vmul.f32 0.01, %v709_v34 }
 0x106   :  { %vm805_vm11 = vcmp.ge.f32.partialorder %v741_v35, 0.0  ;;  %v869_v43 = vmul.f32 0.01, %v741_v35  ;;  %v903_v44 = vsel %vm775_vm8, %v711_v28, %v839_v38  ;;  %v712_v46 = vadd.f32 %v1400_v42, %v641_v30  ;;  %v1137_v48 = vpop.f32.mrb[8].mxu0  ;;  %v1169_v49 = vpop.f32.mrb[8].mxu1 }
 0x107   :  { %v935_v45 = vsel %vm807_vm9, %v743_v29, %v871_v39  ;;  %v744_v47 = vadd.f32 %v1400_v42, %v673_v31  ;;  %967 = vst [vmem:[%s1756_s4 + $0x30] sm:$0xff] %v903_v44  ;;  %v901_v50 = vsel %vm773_vm10, %v709_v34, %v837_v41  ;;  %v710_v52 = vadd.f32 %v1400_v42, %v639_v36  ;;  %v404_v54 = vpop.f32.mrb[9].mxu0  ;;  %v532_v55 = vpop.f32.mrb[9].mxu1 }
 0x108   :  { %999 = vst [vmem:[%s1756_s4 + $0x130] sm:$0xff] %v935_v45  ;;  %v933_v51 = vsel %vm805_vm11, %v741_v35, %v869_v43  ;;  %v742_v53 = vadd.f32 %v1400_v42, %v671_v37  ;;  %965 = vst [vmem:[%s1756_s4 + $0x20] sm:$0xff] %v901_v50  ;;  %vm776_vm12 = vcmp.ge.f32.partialorder %v712_v46, 0.0  ;;  %v840_v56 = vmul.f32 0.01, %v712_v46  ;;  %v1138_v0 = vpop.f32.mrb[10].mxu0 }
 0x109   :  { %997 = vst [vmem:[%s1756_s4 + $0x120] sm:$0xff] %v933_v51  ;;  %vm808_vm13 = vcmp.ge.f32.partialorder %v744_v47, 0.0  ;;  %v872_v57 = vmul.f32 0.01, %v744_v47  ;;  %vm774_vm14 = vcmp.ge.f32.partialorder %v710_v52, 0.0  ;;  %v644_v62 = vmul.f32 %v1137_v48, %v1395_v40  ;;  %v1170_v1 = vpop.f32.mrb[10].mxu1 }
 0x10a   :  { %v838_v58 = vmul.f32 0.01, %v710_v52  ;;  %vm806_vm15 = vcmp.ge.f32.partialorder %v742_v53, 0.0  ;;  %v870_v59 = vmul.f32 0.01, %v742_v53  ;;  %v904_v60 = vsel %vm776_vm12, %v712_v46, %v840_v56  ;;  %v407_v6 = vpop.f32.mrb[11].mxu0 }
 0x10b   :  { %v936_v61 = vsel %vm808_vm13, %v744_v47, %v872_v57  ;;  %v676_v63 = vmul.f32 %v1169_v49, %v1395_v40  ;;  %968 = vst [vmem:[%s1756_s4 + $0x38] sm:$0xff] %v904_v60  ;;  %v642_v4 = vmul.f32 %v1395_v40, %v404_v54  ;;  %v674_v5 = vmul.f32 %v1395_v40, %v532_v55  ;;  %v535_v7 = vpop.f32.mrb[11].mxu1 }
 0x10c   :  { %1000 = vst [vmem:[%s1756_s4 + $0x138] sm:$0xff] %v936_v61  ;;  %v902_v2 = vsel %vm774_vm14, %v710_v52, %v838_v58  ;;  %v934_v3 = vsel %vm806_vm15, %v742_v53, %v870_v59  ;;  %v715_v8 = vadd.f32 %v1400_v42, %v644_v62  ;;  %v645_v10 = vmul.f32 %v1138_v0, %v1395_v40 }
 0x10d   :  { %966 = vst [vmem:[%s1756_s4 + $0x28] sm:$0xff] %v902_v2  ;;  %998 = vst [vmem:[%s1756_s4 + $0x128] sm:$0xff] %v934_v3  ;;  %v747_v9 = vadd.f32 %v1400_v42, %v676_v63  ;;  %v677_v11 = vmul.f32 %v1170_v1, %v1395_v40  ;;  %v713_v12 = vadd.f32 %v1400_v42, %v642_v4  ;;  %v1141_v16 = vpop.f32.mrb[12].mxu0  ;;  %v1173_v17 = vpop.f32.mrb[12].mxu1 }
 0x10e   :  { %v745_v13 = vadd.f32 %v1400_v42, %v674_v5  ;;  %v643_v14 = vmul.f32 %v1395_v40, %v407_v6  ;;  %v675_v15 = vmul.f32 %v1395_v40, %v535_v7  ;;  %vm779_vm0 = vcmp.ge.f32.partialorder %v715_v8, 0.0  ;;  %v420_v26 = vpop.f32.mrb[13].mxu0  ;;  %v548_v27 = vpop.f32.mrb[13].mxu1 }
 0x10f   :  { %v843_v18 = vmul.f32 0.01, %v715_v8  ;;  %vm811_vm1 = vcmp.ge.f32.partialorder %v747_v9, 0.0  ;;  %v875_v19 = vmul.f32 0.01, %v747_v9  ;;  %vm777_vm2 = vcmp.ge.f32.partialorder %v713_v12, 0.0 }
 0x110   :  { %v841_v20 = vmul.f32 0.01, %v713_v12  ;;  %vm809_vm3 = vcmp.ge.f32.partialorder %v745_v13, 0.0  ;;  %v873_v21 = vmul.f32 0.01, %v745_v13  ;;  %v716_v24 = vadd.f32 %v1400_v42, %v645_v10  ;;  %v1142_v32 = vpop.f32.mrb[14].mxu0 }
 0x111   :  { %v907_v22 = vsel %vm779_vm0, %v715_v8, %v843_v18  ;;  %v939_v23 = vsel %vm811_vm1, %v747_v9, %v875_v19  ;;  %v748_v25 = vadd.f32 %v1400_v42, %v677_v11  ;;  %v714_v30 = vadd.f32 %v1400_v42, %v643_v14  ;;  %v1174_v33 = vpop.f32.mrb[14].mxu1  ;;  %v423_v44 = vpop.f32.mrb[15].mxu0 }
 0x112   :  { %971 = vst [vmem:[%s1756_s4 + $0x50] sm:$0xff] %v907_v22  ;;  %1003 = vst [vmem:[%s1756_s4 + $0x150] sm:$0xff] %v939_v23  ;;  %v905_v28 = vsel %vm777_vm2, %v713_v12, %v841_v20  ;;  %v937_v29 = vsel %vm809_vm3, %v745_v13, %v873_v21  ;;  %v746_v31 = vadd.f32 %v1400_v42, %v675_v15  ;;  %vm780_vm4 = vcmp.ge.f32.partialorder %v716_v24, 0.0  ;;  %v551_v45 = vpop.f32.mrb[15].mxu1 }
 0x113   :  { %969 = vst [vmem:[%s1756_s4 + $0x40] sm:$0xff] %v905_v28  ;;  %1001 = vst [vmem:[%s1756_s4 + $0x140] sm:$0xff] %v937_v29  ;;  %v844_v34 = vmul.f32 0.01, %v716_v24  ;;  %vm812_vm5 = vcmp.ge.f32.partialorder %v748_v25, 0.0  ;;  %vm778_vm6 = vcmp.ge.f32.partialorder %v714_v30, 0.0  ;;  %v648_v41 = vmul.f32 %v1141_v16, %v1395_v40 }
 0x114   :  { %v876_v35 = vmul.f32 0.01, %v748_v25  ;;  %v842_v36 = vmul.f32 0.01, %v714_v30  ;;  %vm810_vm7 = vcmp.ge.f32.partialorder %v746_v31, 0.0  ;;  %v680_v43 = vmul.f32 %v1173_v17, %v1395_v40 }
 0x115   :  { %v874_v37 = vmul.f32 0.01, %v746_v31  ;;  %v908_v38 = vsel %vm780_vm4, %v716_v24, %v844_v34  ;;  %v646_v48 = vmul.f32 %v1395_v40, %v420_v26  ;;  %v678_v49 = vmul.f32 %v1395_v40, %v548_v27  ;;  %v1145_v50 = vpop.f32.mrb[16].mxu0  ;;  %v1177_v51 = vpop.f32.mrb[16].mxu1 }
 0x116   :  { %v940_v39 = vsel %vm812_vm5, %v748_v25, %v876_v35  ;;  %972 = vst [vmem:[%s1756_s4 + $0x58] sm:$0xff] %v908_v38  ;;  %v906_v46 = vsel %vm778_vm6, %v714_v30, %v842_v36  ;;  %v719_v52 = vadd.f32 %v1400_v42, %v648_v41  ;;  %v751_v53 = vadd.f32 %v1400_v42, %v680_v43  ;;  %v436_v56 = vpop.f32.mrb[17].mxu0  ;;  %v564_v57 = vpop.f32.mrb[17].mxu1 }
 0x117   :  { %1004 = vst [vmem:[%s1756_s4 + $0x158] sm:$0xff] %v940_v39  ;;  %v938_v47 = vsel %vm810_vm7, %v746_v31, %v874_v37  ;;  %970 = vst [vmem:[%s1756_s4 + $0x48] sm:$0xff] %v906_v46  ;;  %v649_v54 = vmul.f32 %v1142_v32, %v1395_v40  ;;  %v681_v55 = vmul.f32 %v1174_v33, %v1395_v40  ;;  %v1146_v62 = vpop.f32.mrb[18].mxu0  ;;  %v1178_v63 = vpop.f32.mrb[18].mxu1 }
 0x118   :  { %1002 = vst [vmem:[%s1756_s4 + $0x148] sm:$0xff] %v938_v47  ;;  %v717_v58 = vadd.f32 %v1400_v42, %v646_v48  ;;  %v749_v59 = vadd.f32 %v1400_v42, %v678_v49  ;;  %v647_v60 = vmul.f32 %v1395_v40, %v423_v44  ;;  %v679_v61 = vmul.f32 %v1395_v40, %v551_v45  ;;  %v439_v8 = vpop.f32.mrb[19].mxu0  ;;  %v567_v9 = vpop.f32.mrb[19].mxu1 }
 0x119   :  { %vm783_vm8 = vcmp.ge.f32.partialorder %v719_v52, 0.0  ;;  %v847_v0 = vmul.f32 0.01, %v719_v52  ;;  %vm815_vm9 = vcmp.ge.f32.partialorder %v751_v53, 0.0  ;;  %v879_v1 = vmul.f32 0.01, %v751_v53 }
 0x11a   :  { %vm781_vm10 = vcmp.ge.f32.partialorder %v717_v58, 0.0  ;;  %v845_v2 = vmul.f32 0.01, %v717_v58  ;;  %vm813_vm11 = vcmp.ge.f32.partialorder %v749_v59, 0.0  ;;  %v877_v3 = vmul.f32 0.01, %v749_v59 }
 0x11b   :  { %v911_v4 = vsel %vm783_vm8, %v719_v52, %v847_v0  ;;  %v943_v5 = vsel %vm815_vm9, %v751_v53, %v879_v1  ;;  %v720_v6 = vadd.f32 %v1400_v42, %v649_v54  ;;  %v752_v7 = vadd.f32 %v1400_v42, %v681_v55 }
 0x11c   :  { %975 = vst [vmem:[%s1756_s4 + $0x70] sm:$0xff] %v911_v4  ;;  %1007 = vst [vmem:[%s1756_s4 + $0x170] sm:$0xff] %v943_v5  ;;  %v909_v10 = vsel %vm781_vm10, %v717_v58, %v845_v2  ;;  %v941_v11 = vsel %vm813_vm11, %v749_v59, %v877_v3  ;;  %v718_v12 = vadd.f32 %v1400_v42, %v647_v60 }
 0x11d   :  { %v750_v13 = vadd.f32 %v1400_v42, %v679_v61  ;;  %973 = vst [vmem:[%s1756_s4 + $0x60] sm:$0xff] %v909_v10  ;;  %1005 = vst [vmem:[%s1756_s4 + $0x160] sm:$0xff] %v941_v11  ;;  %vm784_vm12 = vcmp.ge.f32.partialorder %v720_v6, 0.0  ;;  %v848_v14 = vmul.f32 0.01, %v720_v6  ;;  %vm816_vm13 = vcmp.ge.f32.partialorder %v752_v7, 0.0 }
 0x11e   :  { %v880_v15 = vmul.f32 0.01, %v752_v7  ;;  %vm782_vm14 = vcmp.ge.f32.partialorder %v718_v12, 0.0  ;;  %v846_v16 = vmul.f32 0.01, %v718_v12  ;;  %v652_v20 = vmul.f32 %v1145_v50, %v1395_v40  ;;  %v1149_v22 = vpop.f32.mrb[20].mxu0 }
 0x11f   :  { %vm814_vm15 = vcmp.ge.f32.partialorder %v750_v13, 0.0  ;;  %v878_v17 = vmul.f32 0.01, %v750_v13  ;;  %v912_v18 = vsel %vm784_vm12, %v720_v6, %v848_v14  ;;  %v684_v21 = vmul.f32 %v1177_v51, %v1395_v40  ;;  %v1181_v23 = vpop.f32.mrb[20].mxu1  ;;  %v452_v28 = vpop.f32.mrb[21].mxu0 }
 0x120   :  { %v944_v19 = vsel %vm816_vm13, %v752_v7, %v880_v15  ;;  %976 = vst [vmem:[%s1756_s4 + $0x78] sm:$0xff] %v912_v18  ;;  %v910_v24 = vsel %vm782_vm14, %v718_v12, %v846_v16  ;;  %v650_v26 = vmul.f32 %v1395_v40, %v436_v56  ;;  %v682_v27 = vmul.f32 %v1395_v40, %v564_v57  ;;  %v580_v29 = vpop.f32.mrb[21].mxu1  ;;  %v1150_v34 = vpop.f32.mrb[22].mxu0 }
 0x121   :  { %1008 = vst [vmem:[%s1756_s4 + $0x178] sm:$0xff] %v944_v19  ;;  %v942_v25 = vsel %vm814_vm15, %v750_v13, %v878_v17  ;;  %974 = vst [vmem:[%s1756_s4 + $0x68] sm:$0xff] %v910_v24  ;;  %v723_v30 = vadd.f32 %v1400_v42, %v652_v20  ;;  %v755_v31 = vadd.f32 %v1400_v42, %v684_v21  ;;  %v1182_v35 = vpop.f32.mrb[22].mxu1  ;;  %v455_v41 = vpop.f32.mrb[23].mxu0 }
 0x122   :  { %1006 = vst [vmem:[%s1756_s4 + $0x168] sm:$0xff] %v942_v25  ;;  %v653_v32 = vmul.f32 %v1146_v62, %v1395_v40  ;;  %v685_v33 = vmul.f32 %v1178_v63, %v1395_v40  ;;  %v721_v36 = vadd.f32 %v1400_v42, %v650_v26  ;;  %v753_v37 = vadd.f32 %v1400_v42, %v682_v27  ;;  %v583_v43 = vpop.f32.mrb[23].mxu1 }
 0x123   :  { %v651_v38 = vmul.f32 %v1395_v40, %v439_v8  ;;  %v683_v39 = vmul.f32 %v1395_v40, %v567_v9  ;;  %vm787_vm0 = vcmp.ge.f32.partialorder %v723_v30, 0.0  ;;  %v851_v44 = vmul.f32 0.01, %v723_v30 }
 0x124   :  { %vm819_vm1 = vcmp.ge.f32.partialorder %v755_v31, 0.0  ;;  %v883_v45 = vmul.f32 0.01, %v755_v31  ;;  %vm785_vm2 = vcmp.ge.f32.partialorder %v721_v36, 0.0  ;;  %v849_v46 = vmul.f32 0.01, %v721_v36 }
 0x125   :  { %vm817_vm3 = vcmp.ge.f32.partialorder %v753_v37, 0.0  ;;  %v881_v47 = vmul.f32 0.01, %v753_v37  ;;  %v915_v48 = vsel %vm787_vm0, %v723_v30, %v851_v44  ;;  %v724_v50 = vadd.f32 %v1400_v42, %v653_v32  ;;  %v1584_v56 = vpop.f32.mrb[24].mxu0  ;;  %v1586_v57 = vpop.f32.mrb[24].mxu1 }
 0x126   :  { %v947_v49 = vsel %vm819_vm1, %v755_v31, %v883_v45  ;;  %v756_v51 = vadd.f32 %v1400_v42, %v685_v33  ;;  %979 = vst [vmem:[%s1756_s4 + $0x90] sm:$0xff] %v915_v48  ;;  %v913_v52 = vsel %vm785_vm2, %v721_v36, %v849_v46  ;;  %v722_v54 = vadd.f32 %v1400_v42, %v651_v38  ;;  %v1596_v2 = vpop.f32.mrb[25].mxu0  ;;  %v1598_v3 = vpop.f32.mrb[25].mxu1 }
 0x127   :  { %1011 = vst [vmem:[%s1756_s4 + $0x190] sm:$0xff] %v947_v49  ;;  %v945_v53 = vsel %vm817_vm3, %v753_v37, %v881_v47  ;;  %v754_v55 = vadd.f32 %v1400_v42, %v683_v39  ;;  %977 = vst [vmem:[%s1756_s4 + $0x80] sm:$0xff] %v913_v52  ;;  %vm788_vm4 = vcmp.ge.f32.partialorder %v724_v50, 0.0  ;;  %v852_v58 = vmul.f32 0.01, %v724_v50  ;;  %v1608_v8 = vpop.f32.mrb[26].mxu0 }
 0x128   :  { %1009 = vst [vmem:[%s1756_s4 + $0x180] sm:$0xff] %v945_v53  ;;  %vm820_vm5 = vcmp.ge.f32.partialorder %v756_v51, 0.0  ;;  %v884_v59 = vmul.f32 0.01, %v756_v51  ;;  %vm786_vm6 = vcmp.ge.f32.partialorder %v722_v54, 0.0  ;;  %v656_v0 = vmul.f32 %v1149_v22, %v1395_v40  ;;  %v1610_v9 = vpop.f32.mrb[26].mxu1 }
 0x129   :  { %v850_v60 = vmul.f32 0.01, %v722_v54  ;;  %vm818_vm7 = vcmp.ge.f32.partialorder %v754_v55, 0.0  ;;  %v882_v61 = vmul.f32 0.01, %v754_v55  ;;  %v916_v62 = vsel %vm788_vm4, %v724_v50, %v852_v58  ;;  %v471_v14 = vpop.f32.mrb[27].mxu0 }
 0x12a   :  { %v948_v63 = vsel %vm820_vm5, %v756_v51, %v884_v59  ;;  %v688_v1 = vmul.f32 %v1181_v23, %v1395_v40  ;;  %980 = vst [vmem:[%s1756_s4 + $0x98] sm:$0xff] %v916_v62  ;;  %v654_v6 = vmul.f32 %v1395_v40, %v452_v28  ;;  %v686_v7 = vmul.f32 %v1395_v40, %v580_v29  ;;  %v599_v15 = vpop.f32.mrb[27].mxu1 }
 0x12b   :  { %1012 = vst [vmem:[%s1756_s4 + $0x198] sm:$0xff] %v948_v63  ;;  %v914_v4 = vsel %vm786_vm6, %v722_v54, %v850_v60  ;;  %v946_v5 = vsel %vm818_vm7, %v754_v55, %v882_v61  ;;  %v727_v10 = vadd.f32 %v1400_v42, %v656_v0  ;;  %v657_v12 = vmul.f32 %v1150_v34, %v1395_v40 }
 0x12c   :  { %978 = vst [vmem:[%s1756_s4 + $0x88] sm:$0xff] %v914_v4  ;;  %1010 = vst [vmem:[%s1756_s4 + $0x188] sm:$0xff] %v946_v5  ;;  %v759_v11 = vadd.f32 %v1400_v42, %v688_v1  ;;  %v689_v13 = vmul.f32 %v1182_v35, %v1395_v40  ;;  %v725_v16 = vadd.f32 %v1400_v42, %v654_v6 }
 0x12d   :  { %v757_v17 = vadd.f32 %v1400_v42, %v686_v7  ;;  %v655_v18 = vmul.f32 %v1395_v40, %v455_v41  ;;  %v687_v19 = vmul.f32 %v1395_v40, %v583_v43  ;;  %vm791_vm8 = vcmp.ge.f32.partialorder %v727_v10, 0.0  ;;  %v1628_v28 = vpop.f32.mrb[28].mxu0  ;;  %v1630_v29 = vpop.f32.mrb[28].mxu1 }
 0x12e   :  { %v855_v20 = vmul.f32 0.01, %v727_v10  ;;  %vm823_vm9 = vcmp.ge.f32.partialorder %v759_v11, 0.0  ;;  %v887_v21 = vmul.f32 0.01, %v759_v11  ;;  %vm789_vm10 = vcmp.ge.f32.partialorder %v725_v16, 0.0 }
 0x12f   :  { %v853_v22 = vmul.f32 0.01, %v725_v16  ;;  %vm821_vm11 = vcmp.ge.f32.partialorder %v757_v17, 0.0  ;;  %v885_v23 = vmul.f32 0.01, %v757_v17  ;;  %v728_v26 = vadd.f32 %v1400_v42, %v657_v12  ;;  %v1640_v34 = vpop.f32.mrb[29].mxu0 }
 0x130   :  { %v919_v24 = vsel %vm791_vm8, %v727_v10, %v855_v20  ;;  %v951_v25 = vsel %vm823_vm9, %v759_v11, %v887_v21  ;;  %v760_v27 = vadd.f32 %v1400_v42, %v689_v13  ;;  %v726_v32 = vadd.f32 %v1400_v42, %v655_v18  ;;  %v1642_v35 = vpop.f32.mrb[29].mxu1  ;;  %v1158_v46 = vpop.f32.mrb[30].mxu0 }
 0x131   :  { %983 = vst [vmem:[%s1756_s4 + $0xb0] sm:$0xff] %v919_v24  ;;  %1015 = vst [vmem:[%s1756_s4 + $0x1b0] sm:$0xff] %v951_v25  ;;  %v917_v30 = vsel %vm789_vm10, %v725_v16, %v853_v22  ;;  %v949_v31 = vsel %vm821_vm11, %v757_v17, %v885_v23  ;;  %v758_v33 = vadd.f32 %v1400_v42, %v687_v19  ;;  %vm792_vm12 = vcmp.ge.f32.partialorder %v728_v26, 0.0  ;;  %v1190_v47 = vpop.f32.mrb[30].mxu1  ;;  %v487_v52 = vpop.f32.mrb[31].mxu0 }
 0x132   :  { %981 = vst [vmem:[%s1756_s4 + $0xa0] sm:$0xff] %v917_v30  ;;  %1013 = vst [vmem:[%s1756_s4 + $0x1a0] sm:$0xff] %v949_v31  ;;  %v856_v36 = vmul.f32 0.01, %v728_v26  ;;  %vm824_vm13 = vcmp.ge.f32.partialorder %v760_v27, 0.0  ;;  %vm790_vm14 = vcmp.ge.f32.partialorder %v726_v32, 0.0  ;;  %v660_v44 = vmul.f32 %v1584_v56, %v1395_v40 }
 0x133   :  { %v888_v37 = vmul.f32 0.01, %v760_v27  ;;  %v854_v38 = vmul.f32 0.01, %v726_v32  ;;  %vm822_vm15 = vcmp.ge.f32.partialorder %v758_v33, 0.0  ;;  %v692_v45 = vmul.f32 %v1586_v57, %v1395_v40  ;;  %v615_v53 = vpop.f32.mrb[31].mxu1 }
 0x134   :  { %v886_v39 = vmul.f32 0.01, %v758_v33  ;;  %v920_v41 = vsel %vm792_vm12, %v728_v26, %v856_v36  ;;  %v658_v50 = vmul.f32 %v1395_v40, %v1596_v2  ;;  %v690_v51 = vmul.f32 %v1395_v40, %v1598_v3 }
 0x135   :  { %v952_v43 = vsel %vm824_vm13, %v760_v27, %v888_v37  ;;  %984 = vst [vmem:[%s1756_s4 + $0xb8] sm:$0xff] %v920_v41  ;;  %v918_v48 = vsel %vm790_vm14, %v726_v32, %v854_v38  ;;  %v731_v54 = vadd.f32 %v1400_v42, %v660_v44  ;;  %v763_v55 = vadd.f32 %v1400_v42, %v692_v45 }
 0x136   :  { %1016 = vst [vmem:[%s1756_s4 + $0x1b8] sm:$0xff] %v952_v43  ;;  %v950_v49 = vsel %vm822_vm15, %v758_v33, %v886_v39  ;;  %982 = vst [vmem:[%s1756_s4 + $0xa8] sm:$0xff] %v918_v48  ;;  %v661_v56 = vmul.f32 %v1608_v8, %v1395_v40  ;;  %v693_v57 = vmul.f32 %v1610_v9, %v1395_v40 }
 0x137   :  { %1014 = vst [vmem:[%s1756_s4 + $0x1a8] sm:$0xff] %v950_v49  ;;  %v729_v58 = vadd.f32 %v1400_v42, %v658_v50  ;;  %v761_v59 = vadd.f32 %v1400_v42, %v690_v51  ;;  %v659_v60 = vmul.f32 %v1395_v40, %v471_v14  ;;  %v691_v61 = vmul.f32 %v1395_v40, %v599_v15 }
 0x138   :  { %vm795_vm0 = vcmp.ge.f32.partialorder %v731_v54, 0.0  ;;  %v859_v62 = vmul.f32 0.01, %v731_v54  ;;  %vm827_vm1 = vcmp.ge.f32.partialorder %v763_v55, 0.0  ;;  %v891_v63 = vmul.f32 0.01, %v763_v55 }
 0x139   :  { %vm793_vm2 = vcmp.ge.f32.partialorder %v729_v58, 0.0  ;;  %v857_v0 = vmul.f32 0.01, %v729_v58  ;;  %vm825_vm3 = vcmp.ge.f32.partialorder %v761_v59, 0.0  ;;  %v889_v1 = vmul.f32 0.01, %v761_v59 }
 0x13a   :  { %v923_v2 = vsel %vm795_vm0, %v731_v54, %v859_v62  ;;  %v955_v3 = vsel %vm827_vm1, %v763_v55, %v891_v63  ;;  %v732_v4 = vadd.f32 %v1400_v42, %v661_v56  ;;  %v764_v5 = vadd.f32 %v1400_v42, %v693_v57 }
 0x13b   :  { %987 = vst [vmem:[%s1756_s4 + $0xd0] sm:$0xff] %v923_v2  ;;  %1019 = vst [vmem:[%s1756_s4 + $0x1d0] sm:$0xff] %v955_v3  ;;  %v921_v6 = vsel %vm793_vm2, %v729_v58, %v857_v0  ;;  %v953_v7 = vsel %vm825_vm3, %v761_v59, %v889_v1  ;;  %v730_v8 = vadd.f32 %v1400_v42, %v659_v60 }
 0x13c   :  { %v762_v9 = vadd.f32 %v1400_v42, %v691_v61  ;;  %985 = vst [vmem:[%s1756_s4 + $0xc0] sm:$0xff] %v921_v6  ;;  %1017 = vst [vmem:[%s1756_s4 + $0x1c0] sm:$0xff] %v953_v7  ;;  %vm796_vm4 = vcmp.ge.f32.partialorder %v732_v4, 0.0  ;;  %v860_v10 = vmul.f32 0.01, %v732_v4  ;;  %vm828_vm5 = vcmp.ge.f32.partialorder %v764_v5, 0.0 }
 0x13d   :  { %v892_v11 = vmul.f32 0.01, %v764_v5  ;;  %vm794_vm6 = vcmp.ge.f32.partialorder %v730_v8, 0.0  ;;  %v858_v12 = vmul.f32 0.01, %v730_v8  ;;  %v664_v16 = vmul.f32 %v1628_v28, %v1395_v40 }
 0x13e   :  { %vm826_vm7 = vcmp.ge.f32.partialorder %v762_v9, 0.0  ;;  %v890_v13 = vmul.f32 0.01, %v762_v9  ;;  %v924_v14 = vsel %vm796_vm4, %v732_v4, %v860_v10  ;;  %v696_v17 = vmul.f32 %v1630_v29, %v1395_v40 }
 0x13f   :  { %v956_v15 = vsel %vm828_vm5, %v764_v5, %v892_v11  ;;  %988 = vst [vmem:[%s1756_s4 + $0xd8] sm:$0xff] %v924_v14  ;;  %v922_v18 = vsel %vm794_vm6, %v730_v8, %v858_v12  ;;  %v662_v20 = vmul.f32 %v1395_v40, %v1640_v34  ;;  %v694_v21 = vmul.f32 %v1395_v40, %v1642_v35 }
 0x140   :  { %1020 = vst [vmem:[%s1756_s4 + $0x1d8] sm:$0xff] %v956_v15  ;;  %v954_v19 = vsel %vm826_vm7, %v762_v9, %v890_v13  ;;  %986 = vst [vmem:[%s1756_s4 + $0xc8] sm:$0xff] %v922_v18  ;;  %v735_v22 = vadd.f32 %v1400_v42, %v664_v16  ;;  %v767_v23 = vadd.f32 %v1400_v42, %v696_v17 }
 0x141   :  { %1018 = vst [vmem:[%s1756_s4 + $0x1c8] sm:$0xff] %v954_v19  ;;  %v665_v24 = vmul.f32 %v1158_v46, %v1395_v40  ;;  %v697_v25 = vmul.f32 %v1190_v47, %v1395_v40  ;;  %v733_v26 = vadd.f32 %v1400_v42, %v662_v20  ;;  %v765_v27 = vadd.f32 %v1400_v42, %v694_v21 }
 0x142   :  { %v663_v28 = vmul.f32 %v1395_v40, %v487_v52  ;;  %v695_v29 = vmul.f32 %v1395_v40, %v615_v53  ;;  %vm799_vm8 = vcmp.ge.f32.partialorder %v735_v22, 0.0  ;;  %v863_v30 = vmul.f32 0.01, %v735_v22 }
 0x143   :  { %vm831_vm9 = vcmp.ge.f32.partialorder %v767_v23, 0.0  ;;  %v895_v31 = vmul.f32 0.01, %v767_v23  ;;  %vm797_vm10 = vcmp.ge.f32.partialorder %v733_v26, 0.0  ;;  %v861_v32 = vmul.f32 0.01, %v733_v26 }
 0x144   :  { %vm829_vm11 = vcmp.ge.f32.partialorder %v765_v27, 0.0  ;;  %v893_v33 = vmul.f32 0.01, %v765_v27  ;;  %v927_v34 = vsel %vm799_vm8, %v735_v22, %v863_v30  ;;  %v736_v36 = vadd.f32 %v1400_v42, %v665_v24 }
 0x145   :  { %v959_v35 = vsel %vm831_vm9, %v767_v23, %v895_v31  ;;  %v768_v37 = vadd.f32 %v1400_v42, %v697_v25  ;;  %991 = vst [vmem:[%s1756_s4 + $0xf0] sm:$0xff] %v927_v34  ;;  %v925_v40 = vsel %vm797_vm10, %v733_v26, %v861_v32  ;;  %v734_v39 = vadd.f32 %v1400_v42, %v663_v28 }
 0x146   :  { %1023 = vst [vmem:[%s1756_s4 + $0x1f0] sm:$0xff] %v959_v35  ;;  %v957_v38 = vsel %vm829_vm11, %v765_v27, %v893_v33  ;;  %v766_v41 = vadd.f32 %v1400_v42, %v695_v29  ;;  %989 = vst [vmem:[%s1756_s4 + $0xe0] sm:$0xff] %v925_v40  ;;  %vm800_vm12 = vcmp.ge.f32.partialorder %v736_v36, 0.0  ;;  %v864_v43 = vmul.f32 0.01, %v736_v36 }
 0x147   :  { %1021 = vst [vmem:[%s1756_s4 + $0x1e0] sm:$0xff] %v957_v38  ;;  %vm832_vm13 = vcmp.ge.f32.partialorder %v768_v37, 0.0  ;;  %v896_v44 = vmul.f32 0.01, %v768_v37  ;;  %vm798_vm14 = vcmp.ge.f32.partialorder %v734_v39, 0.0 }
 0x148   :  { %v862_v45 = vmul.f32 0.01, %v734_v39  ;;  %vm830_vm15 = vcmp.ge.f32.partialorder %v766_v41, 0.0  ;;  %v894_v46 = vmul.f32 0.01, %v766_v41  ;;  %v928_v47 = vsel %vm800_vm12, %v736_v36, %v864_v43 }
 0x149   :  { %v960_v48 = vsel %vm832_vm13, %v768_v37, %v896_v44  ;;  %992 = vst [vmem:[%s1756_s4 + $0xf8] sm:$0xff] %v928_v47 }
 0x14a   :  { %1024 = vst [vmem:[%s1756_s4 + $0x1f8] sm:$0xff] %v960_v48  ;;  %v926_v42 = vsel %vm798_vm14, %v734_v39, %v862_v45  ;;  %v958_v49 = vsel %vm830_vm15, %v766_v41, %v894_v46 }
 0x14b   :  { %990 = vst [vmem:[%s1756_s4 + $0xe8] sm:$0xff] %v926_v42  ;;  %1022 = vst [vmem:[%s1756_s4 + $0x1e8] sm:$0xff] %v958_v49 }

</bundles_post_ra>
